<compile_context>
chip_gen: v5e
topology: v5e:2x2
jax: 0.10.0
libtpu: 0.0.40
codegen_flags: <defaults>
</compile_context>

<pallas_src>
import jax
import jax.numpy as jnp
import numpy as np
from jax.experimental import pallas as pl
from jax.experimental.pallas import tpu as pltpu


# --------------------------- parameter preparation ---------------------------
def init_params(key, hidden_size, output_size):
    H, O = hidden_size, output_size
    bound = 1.0 / np.sqrt(H)
    shapes = [
        (1, 4 * H), (H, 4 * H), (1, 4 * H),      # encoder layer 0 (input_size = 1)
        (H, 4 * H), (H, 4 * H), (1, 4 * H),      # encoder layer 1
        (O, 4 * H), (H, 4 * H), (1, 4 * H),      # decoder layer 0 (input = output_size)
        (H, 4 * H), (H, 4 * H), (1, 4 * H),      # decoder layer 1
        (H, O), (1, O),                          # fc
    ]
    keys = jax.random.split(key, len(shapes))
    return [jax.random.uniform(k, s, jnp.float32, -bound, bound)
            for k, s in zip(keys, shapes)]


def prepare_packed_weights(params, hidden_size, output_size):
    """One-time prep: fuse FC into the decoder feedback path, stack the per-cell
    matmul pairs along the contraction axis and pack everything into a single
    (R, 4H) f32 slab (one DMA at kernel launch)."""
    (e_wih0, e_whh0, e_b0, e_wih1, e_whh1, e_b1,
     d_wih0, d_whh0, d_b0, d_wih1, d_whh1, d_b1, fc_w, fc_b) = params
    H, O, G = hidden_size, output_size, 4 * hidden_size

    # y_prev @ d_wih0 = (h1 @ fc_w + fc_b) @ d_wih0 = h1 @ (fc_w @ d_wih0) + fc_b @ d_wih0
    w_fused = jnp.dot(fc_w, d_wih0)                   # (H, 4H)
    b_fused = d_b0 + jnp.dot(fc_b, d_wih0)            # (1, 4H)

    fc_w_pad = jnp.zeros((H, G), jnp.float32).at[:, :O].set(fc_w)
    fc_b_pad = jnp.zeros((1, G), jnp.float32).at[:, :O].set(fc_b)

    rows = [
        e_whh0,                 # [0H:1H]  encoder L0 recurrent
        e_wih1, e_whh1,         # [1H:3H]  encoder L1  [ih; hh]  (fused contraction)
        d_whh0, w_fused,        # [3H:5H]  decoder L0  [hh; fc_w@d_wih0]
        d_wih1, d_whh1,         # [5H:7H]  decoder L1  [ih; hh]
        fc_w_pad,               # [7H:8H]  fc weight in column 0
        e_wih0,                 # [8H]     encoder L0 input row
        e_b0, e_b1, d_b0, b_fused, d_b1, fc_b_pad,    # [8H+1 .. 8H+6] bias rows
    ]
    slab = jnp.concatenate(rows, axis=0)
    pad = (-slab.shape[0]) % 8
    if pad:
        slab = jnp.concatenate([slab, jnp.zeros((pad, G), jnp.float32)], axis=0)

    offs = dict(e_hh0=0, enc1=H, dec0=3 * H, dec1=5 * H, fc=7 * H,
                ih0=8 * H, b_e0=8 * H + 1, b_e1=8 * H + 2, b_d0=8 * H + 3,
                b_d0f=8 * H + 4, b_d1=8 * H + 5, b_fc=8 * H + 6)
    return slab, offs


# --------------------------------- kernel -----------------------------------
def make_encdec_kernel(N, H, T_enc, T_dec, O, offs):
    G = 4 * H

    def kernel(x_ref, w_ref, out_ref):
        f32 = jnp.float32

        def dot(a, b):
            return jnp.dot(a, b, preferred_element_type=f32)

        def cell(gates, c_prev=None):
            # one sigmoid + one tanh over the full (N, 4H) gate vector (2 EUP pushes)
            sig = jax.nn.sigmoid(gates)
            th = jnp.tanh(gates)
            ig = sig[:, :H] * th[:, 2 * H:3 * H]                  # i * g
            c_new = ig if c_prev is None else sig[:, H:2 * H] * c_prev + ig
            h_new = sig[:, 3 * H:] * jnp.tanh(c_new)
            return h_new, c_new

        # ---- packed weight slab: static row slices, each region read once ----
        W_e_hh0  = w_ref[offs['e_hh0']:offs['e_hh0'] + H, :]      # (H, 4H)
        W_enc1i  = w_ref[offs['enc1']:offs['enc1'] + H, :]        # enc L1 ih only (t=0)
        W_enc1   = w_ref[offs['enc1']:offs['enc1'] + 2 * H, :]    # [ih; hh]
        W_dec0a  = w_ref[offs['dec0']:offs['dec0'] + H, :]        # dec L0 hh only (t=0)
        W_dec0   = w_ref[offs['dec0']:offs['dec0'] + 2 * H, :]    # [hh; fc_w@d_wih0]
        W_dec1   = w_ref[offs['dec1']:offs['dec1'] + 2 * H, :]    # [ih; hh]
        W_fc     = w_ref[offs['fc']:offs['fc'] + H, :]            # fc weight in col 0
        W_e_ih0  = w_ref[offs['ih0']:offs['ih0'] + 1, :]          # (1, 4H)

        def bias(name, rows=N):
            r = offs[name]
            return jnp.broadcast_to(w_ref[r:r + 1, :], (rows, G))

        B_e1, B_d0, B_d0f, B_d1 = bias('b_e1'), bias('b_d0'), bias('b_d0f'), bias('b_d1')
        B_e0 = bias('b_e0')
        B_fc = bias('b_fc', rows=T_dec * N)

        # ---- encoder layer-0 input projection for all timesteps (off the
        #      serial chain: depends only on x and constants) --------------------
        x_all = x_ref[...]                                        # (N, T_enc)
        xg = [x_all[:, t:t + 1] * W_e_ih0 + B_e0 for t in range(T_enc)]

        # ---- encoder: 2-layer LSTM, fully unrolled over T_enc ------------------
        # t = 0: hidden/cell are zero -> drop the dead recurrent matmuls.
        h0, c0 = cell(xg[0])
        h1, c1 = cell(dot(h0, W_enc1i) + B_e1)
        for t in range(1, T_enc):
            h0, c0 = cell(xg[t] + dot(h0, W_e_hh0), c0)
            g1 = dot(jnp.concatenate([h0, h1], axis=1), W_enc1) + B_e1
            h1, c1 = cell(g1, c1)

        # ---- decoder: autoregressive, FC fused into the layer-0 input proj -----
        h1s = []
        for t in range(T_dec):
            if t == 0:
                g0 = dot(h0, W_dec0a) + B_d0                      # first input is zeros
            else:
                g0 = dot(jnp.concatenate([h0, h1], axis=1), W_dec0) + B_d0f
            h0, c0 = cell(g0, c0)
            g1 = dot(jnp.concatenate([h0, h1], axis=1), W_dec1) + B_d1
            h1, c1 = cell(g1, c1)
            h1s.append(h1)

        # ---- batched output projection + single store ---------------------------
        hstack = jnp.concatenate(h1s, axis=0)                     # (T_dec*N, H)
        y = dot(hstack, W_fc) + B_fc                              # (T_dec*N, 4H), cols [:O] valid
        out_ref[...] = y[:, :O]

    return kernel


# -------------------------------- wrapper ------------------------------------
def encoder_decoder_forward(x, slab, offs, target_len, hidden_size, output_size):
    B, A, T_enc = x.shape
    N = B * A
    H, O = hidden_size, output_size

    # PyTorch: x.reshape(B*A, -1, 1) -- contiguous reshape (no transpose, no copy).
    x2 = x.reshape(N, T_enc).astype(jnp.float32)

    kernel = make_encdec_kernel(N, H, T_enc, target_len, O, offs)
    vmem = pl.BlockSpec(memory_space=pltpu.MemorySpace.VMEM)

    cells = 2 * (T_enc + target_len)
    cost = pl.CostEstimate(
        flops=int(2 * N * (2 * H) * (4 * H) * cells + 2 * target_len * N * H * (4 * H)),
        transcendentals=int(3 * N * 4 * H * cells),
        bytes_accessed=int(slab.size * 4 + x2.size * 4 + target_len * N * O * 4),
    )

    # Gridless single-TC call: N = 6 rows, total VMEM footprint < 0.3 MiB.
    # TODO(synk): only introduce a ("parallel",) grid over row blocks when N >= 16.
    out = pl.pallas_call(
        kernel,
        out_shape=jax.ShapeDtypeStruct((target_len * N, O), jnp.float32),
        in_specs=[vmem, vmem],
        out_specs=vmem,
        cost_estimate=cost,
    )(x2, slab)

    # (T_dec*N, O) -> (B, A, T_dec, O)
    return jnp.transpose(out.reshape(target_len, N, O), (1, 0, 2)).reshape(
        B, A, target_len, O)


# ------------------------------ pure-numpy reference --------------------------
def _np_cell(xg, h, c, whh, b):
    H = h.shape[-1]
    gates = xg + h @ whh + b
    sig = lambda z: 1.0 / (1.0 + np.exp(-z))
    i = sig(gates[:, :H]); f = sig(gates[:, H:2 * H])
    g = np.tanh(gates[:, 2 * H:3 * H]); o = sig(gates[:, 3 * H:4 * H])
    c_new = f * c + i * g
    return o * np.tanh(c_new), c_new


def reference_forward(x, params, target_len, hidden_size, output_size):
    (e_wih0, e_whh0, e_b0, e_wih1, e_whh1, e_b1,
     d_wih0, d_whh0, d_b0, d_wih1, d_whh1, d_b1, fc_w, fc_b) = params
    B, A, T_enc = x.shape
    N, H, O = B * A, hidden_size, output_size
    xs = x.reshape(N, T_enc)
    h = [np.zeros((N, H), np.float32) for _ in range(2)]
    c = [np.zeros((N, H), np.float32) for _ in range(2)]
    for t in range(T_enc):
        x_t = xs[:, t:t + 1]
        h[0], c[0] = _np_cell(x_t @ e_wih0, h[0], c[0], e_whh0, e_b0)
        h[1], c[1] = _np_cell(h[0] @ e_wih1, h[1], c[1], e_whh1, e_b1)
    xd = np.zeros((N, O), np.float32)
    outs = np.zeros((target_len, N, O), np.float32)
    for t in range(target_len):
        h[0], c[0] = _np_cell(xd @ d_wih0, h[0], c[0], d_whh0, d_b0)
        h[1], c[1] = _np_cell(h[0] @ d_wih1, h[1], c[1], d_whh1, d_b1)
        xd = h[1] @ fc_w + fc_b
        outs[t] = xd
    return np.transpose(outs, (1, 0, 2)).reshape(B, A, target_len, O)


# ----------------------------------- main -------------------------------------
if __name__ == "__main__":
    B, A, T_enc = 2, 3, 8          # batch, num_airports, encoder sequence length
    H, O = 32, 1                   # hidden_size, output_size (input_size = 1)
    target_len = 5

    key = jax.random.PRNGKey(0)
    kx, kp = jax.random.split(key)
    x = jax.random.normal(kx, (B, A, T_enc), jnp.float32)
    params = init_params(kp, H, O)

    # one-time parameter prep (single packed slab), outside the forward path
    slab, offs = prepare_packed_weights(params, H, O)
    slab = jax.block_until_ready(slab)

    fwd = jax.jit(lambda xx, ww: encoder_decoder_forward(xx, ww, offs, target_len, H, O))
    out = jax.block_until_ready(fwd(x, slab))

    ref = reference_forward(np.asarray(x, np.float32),
                            [np.asarray(p, np.float32) for p in params],
                            target_len, H, O)
    assert out.shape == (B, A, target_len, O)
    np.testing.assert_allclose(np.asarray(out), ref, rtol=2e-4, atol=1e-4)
    print("KERNEL_OK")
</pallas_src>

<mosaic_0001>
module attributes {stable_mosaic.version = 11 : i64} {
  func.func @kernel(%arg0: memref<6x8xf32, #tpu.memory_space<vmem>>, %arg1: memref<264x128xf32, #tpu.memory_space<vmem>>, %arg2: memref<30x1xf32, #tpu.memory_space<vmem>>) attributes {dimension_semantics = [], scalar_prefetch = 0 : i64, scratch_operands = 0 : i64, tpu.core_type = #tpu.core_type<tc>} {
    %c0 = arith.constant 0 : index
    %c0_0 = arith.constant 0 : index
    %0 = vector.load %arg1[%c0, %c0_0] : memref<264x128xf32, #tpu.memory_space<vmem>>, vector<32x128xf32>
    %c32 = arith.constant 32 : index
    %c0_1 = arith.constant 0 : index
    %1 = vector.load %arg1[%c32, %c0_1] : memref<264x128xf32, #tpu.memory_space<vmem>>, vector<32x128xf32>
    %c32_2 = arith.constant 32 : index
    %c0_3 = arith.constant 0 : index
    %2 = vector.load %arg1[%c32_2, %c0_3] : memref<264x128xf32, #tpu.memory_space<vmem>>, vector<64x128xf32>
    %c96 = arith.constant 96 : index
    %c0_4 = arith.constant 0 : index
    %3 = vector.load %arg1[%c96, %c0_4] : memref<264x128xf32, #tpu.memory_space<vmem>>, vector<32x128xf32>
    %c96_5 = arith.constant 96 : index
    %c0_6 = arith.constant 0 : index
    %4 = vector.load %arg1[%c96_5, %c0_6] : memref<264x128xf32, #tpu.memory_space<vmem>>, vector<64x128xf32>
    %c160 = arith.constant 160 : index
    %c0_7 = arith.constant 0 : index
    %5 = vector.load %arg1[%c160, %c0_7] : memref<264x128xf32, #tpu.memory_space<vmem>>, vector<64x128xf32>
    %c224 = arith.constant 224 : index
    %c0_8 = arith.constant 0 : index
    %6 = vector.load %arg1[%c224, %c0_8] : memref<264x128xf32, #tpu.memory_space<vmem>>, vector<32x128xf32>
    %c256 = arith.constant 256 : index
    %c0_9 = arith.constant 0 : index
    %7 = vector.load %arg1[%c256, %c0_9] : memref<264x128xf32, #tpu.memory_space<vmem>>, vector<1x128xf32>
    %c258 = arith.constant 258 : index
    %c0_10 = arith.constant 0 : index
    %8 = vector.load %arg1[%c258, %c0_10] : memref<264x128xf32, #tpu.memory_space<vmem>>, vector<1x128xf32>
    %9 = vector.shape_cast %8 : vector<1x128xf32> to vector<1x128xf32>
    %10 = vector.broadcast %9 : vector<1x128xf32> to vector<6x128xf32>
    %c259 = arith.constant 259 : index
    %c0_11 = arith.constant 0 : index
    %11 = vector.load %arg1[%c259, %c0_11] : memref<264x128xf32, #tpu.memory_space<vmem>>, vector<1x128xf32>
    %12 = vector.shape_cast %11 : vector<1x128xf32> to vector<1x128xf32>
    %13 = vector.broadcast %12 : vector<1x128xf32> to vector<6x128xf32>
    %c260 = arith.constant 260 : index
    %c0_12 = arith.constant 0 : index
    %14 = vector.load %arg1[%c260, %c0_12] : memref<264x128xf32, #tpu.memory_space<vmem>>, vector<1x128xf32>
    %15 = vector.shape_cast %14 : vector<1x128xf32> to vector<1x128xf32>
    %16 = vector.broadcast %15 : vector<1x128xf32> to vector<6x128xf32>
    %c261 = arith.constant 261 : index
    %c0_13 = arith.constant 0 : index
    %17 = vector.load %arg1[%c261, %c0_13] : memref<264x128xf32, #tpu.memory_space<vmem>>, vector<1x128xf32>
    %18 = vector.shape_cast %17 : vector<1x128xf32> to vector<1x128xf32>
    %19 = vector.broadcast %18 : vector<1x128xf32> to vector<6x128xf32>
    %c257 = arith.constant 257 : index
    %c0_14 = arith.constant 0 : index
    %20 = vector.load %arg1[%c257, %c0_14] : memref<264x128xf32, #tpu.memory_space<vmem>>, vector<1x128xf32>
    %21 = vector.shape_cast %20 : vector<1x128xf32> to vector<1x128xf32>
    %22 = vector.broadcast %21 : vector<1x128xf32> to vector<6x128xf32>
    %c262 = arith.constant 262 : index
    %c0_15 = arith.constant 0 : index
    %23 = vector.load %arg1[%c262, %c0_15] : memref<264x128xf32, #tpu.memory_space<vmem>>, vector<1x128xf32>
    %24 = vector.shape_cast %23 : vector<1x128xf32> to vector<1x128xf32>
    %25 = vector.broadcast %24 : vector<1x128xf32> to vector<30x128xf32>
    %c0_16 = arith.constant 0 : index
    %c0_17 = arith.constant 0 : index
    %26 = vector.load %arg0[%c0_16, %c0_17] : memref<6x8xf32, #tpu.memory_space<vmem>>, vector<6x8xf32>
    %27 = vector.extract_strided_slice %26 {offsets = [0, 0], sizes = [6, 1], strides = [1, 1]} : vector<6x8xf32> to vector<6x1xf32>
    %28 = vector.broadcast %27 : vector<6x1xf32> to vector<6x128xf32>
    %29 = vector.broadcast %7 : vector<1x128xf32> to vector<6x128xf32>
    %30 = arith.mulf %28, %29 : vector<6x128xf32>
    %31 = arith.addf %30, %22 : vector<6x128xf32>
    %32 = vector.extract_strided_slice %26 {offsets = [0, 1], sizes = [6, 1], strides = [1, 1]} : vector<6x8xf32> to vector<6x1xf32>
    %33 = vector.broadcast %32 : vector<6x1xf32> to vector<6x128xf32>
    %34 = vector.broadcast %7 : vector<1x128xf32> to vector<6x128xf32>
    %35 = arith.mulf %33, %34 : vector<6x128xf32>
    %36 = arith.addf %35, %22 : vector<6x128xf32>
    %37 = vector.extract_strided_slice %26 {offsets = [0, 2], sizes = [6, 1], strides = [1, 1]} : vector<6x8xf32> to vector<6x1xf32>
    %38 = vector.broadcast %37 : vector<6x1xf32> to vector<6x128xf32>
    %39 = vector.broadcast %7 : vector<1x128xf32> to vector<6x128xf32>
    %40 = arith.mulf %38, %39 : vector<6x128xf32>
    %41 = arith.addf %40, %22 : vector<6x128xf32>
    %42 = vector.extract_strided_slice %26 {offsets = [0, 3], sizes = [6, 1], strides = [1, 1]} : vector<6x8xf32> to vector<6x1xf32>
    %43 = vector.broadcast %42 : vector<6x1xf32> to vector<6x128xf32>
    %44 = vector.broadcast %7 : vector<1x128xf32> to vector<6x128xf32>
    %45 = arith.mulf %43, %44 : vector<6x128xf32>
    %46 = arith.addf %45, %22 : vector<6x128xf32>
    %47 = vector.extract_strided_slice %26 {offsets = [0, 4], sizes = [6, 1], strides = [1, 1]} : vector<6x8xf32> to vector<6x1xf32>
    %48 = vector.broadcast %47 : vector<6x1xf32> to vector<6x128xf32>
    %49 = vector.broadcast %7 : vector<1x128xf32> to vector<6x128xf32>
    %50 = arith.mulf %48, %49 : vector<6x128xf32>
    %51 = arith.addf %50, %22 : vector<6x128xf32>
    %52 = vector.extract_strided_slice %26 {offsets = [0, 5], sizes = [6, 1], strides = [1, 1]} : vector<6x8xf32> to vector<6x1xf32>
    %53 = vector.broadcast %52 : vector<6x1xf32> to vector<6x128xf32>
    %54 = vector.broadcast %7 : vector<1x128xf32> to vector<6x128xf32>
    %55 = arith.mulf %53, %54 : vector<6x128xf32>
    %56 = arith.addf %55, %22 : vector<6x128xf32>
    %57 = vector.extract_strided_slice %26 {offsets = [0, 6], sizes = [6, 1], strides = [1, 1]} : vector<6x8xf32> to vector<6x1xf32>
    %58 = vector.broadcast %57 : vector<6x1xf32> to vector<6x128xf32>
    %59 = vector.broadcast %7 : vector<1x128xf32> to vector<6x128xf32>
    %60 = arith.mulf %58, %59 : vector<6x128xf32>
    %61 = arith.addf %60, %22 : vector<6x128xf32>
    %62 = vector.extract_strided_slice %26 {offsets = [0, 7], sizes = [6, 1], strides = [1, 1]} : vector<6x8xf32> to vector<6x1xf32>
    %63 = vector.broadcast %62 : vector<6x1xf32> to vector<6x128xf32>
    %64 = vector.broadcast %7 : vector<1x128xf32> to vector<6x128xf32>
    %65 = arith.mulf %63, %64 : vector<6x128xf32>
    %66 = arith.addf %65, %22 : vector<6x128xf32>
    %67 = arith.negf %31 : vector<6x128xf32>
    %68 = math.exp %67 : vector<6x128xf32>
    %cst = arith.constant 1.000000e+00 : f32
    %69 = vector.broadcast %cst : f32 to vector<6x128xf32>
    %70 = arith.addf %69, %68 : vector<6x128xf32>
    %71 = arith.divf %69, %70 : vector<6x128xf32>
    %72 = math.tanh %31 : vector<6x128xf32>
    %73 = vector.extract_strided_slice %71 {offsets = [0, 0], sizes = [6, 32], strides = [1, 1]} : vector<6x128xf32> to vector<6x32xf32>
    %74 = vector.extract_strided_slice %72 {offsets = [0, 64], sizes = [6, 32], strides = [1, 1]} : vector<6x128xf32> to vector<6x32xf32>
    %75 = arith.mulf %73, %74 : vector<6x32xf32>
    %76 = vector.extract_strided_slice %71 {offsets = [0, 96], sizes = [6, 32], strides = [1, 1]} : vector<6x128xf32> to vector<6x32xf32>
    %77 = math.tanh %75 : vector<6x32xf32>
    %78 = arith.mulf %76, %77 : vector<6x32xf32>
    %cst_18 = arith.constant dense<0.000000e+00> : vector<6x128xf32>
    %79 = tpu.matmul %78, %1, %cst_18 {dimension_numbers = #tpu.dot_dimension_numbers<[1], [0], [0], [1], [0, 0, 1, 1], [], []>} : vector<6x32xf32>, vector<32x128xf32>, vector<6x128xf32> -> vector<6x128xf32>
    %80 = arith.addf %79, %10 : vector<6x128xf32>
    %81 = arith.negf %80 : vector<6x128xf32>
    %82 = math.exp %81 : vector<6x128xf32>
    %cst_19 = arith.constant 1.000000e+00 : f32
    %83 = vector.broadcast %cst_19 : f32 to vector<6x128xf32>
    %84 = arith.addf %83, %82 : vector<6x128xf32>
    %85 = arith.divf %83, %84 : vector<6x128xf32>
    %86 = math.tanh %80 : vector<6x128xf32>
    %87 = vector.extract_strided_slice %85 {offsets = [0, 0], sizes = [6, 32], strides = [1, 1]} : vector<6x128xf32> to vector<6x32xf32>
    %88 = vector.extract_strided_slice %86 {offsets = [0, 64], sizes = [6, 32], strides = [1, 1]} : vector<6x128xf32> to vector<6x32xf32>
    %89 = arith.mulf %87, %88 : vector<6x32xf32>
    %90 = vector.extract_strided_slice %85 {offsets = [0, 96], sizes = [6, 32], strides = [1, 1]} : vector<6x128xf32> to vector<6x32xf32>
    %91 = math.tanh %89 : vector<6x32xf32>
    %92 = arith.mulf %90, %91 : vector<6x32xf32>
    %cst_20 = arith.constant dense<0.000000e+00> : vector<6x128xf32>
    %93 = tpu.matmul %78, %0, %cst_20 {dimension_numbers = #tpu.dot_dimension_numbers<[1], [0], [0], [1], [0, 0, 1, 1], [], []>} : vector<6x32xf32>, vector<32x128xf32>, vector<6x128xf32> -> vector<6x128xf32>
    %94 = arith.addf %36, %93 : vector<6x128xf32>
    %95 = arith.negf %94 : vector<6x128xf32>
    %96 = math.exp %95 : vector<6x128xf32>
    %cst_21 = arith.constant 1.000000e+00 : f32
    %97 = vector.broadcast %cst_21 : f32 to vector<6x128xf32>
    %98 = arith.addf %97, %96 : vector<6x128xf32>
    %99 = arith.divf %97, %98 : vector<6x128xf32>
    %100 = math.tanh %94 : vector<6x128xf32>
    %101 = vector.extract_strided_slice %99 {offsets = [0, 0], sizes = [6, 32], strides = [1, 1]} : vector<6x128xf32> to vector<6x32xf32>
    %102 = vector.extract_strided_slice %100 {offsets = [0, 64], sizes = [6, 32], strides = [1, 1]} : vector<6x128xf32> to vector<6x32xf32>
    %103 = arith.mulf %101, %102 : vector<6x32xf32>
    %104 = vector.extract_strided_slice %99 {offsets = [0, 32], sizes = [6, 32], strides = [1, 1]} : vector<6x128xf32> to vector<6x32xf32>
    %105 = arith.mulf %104, %75 : vector<6x32xf32>
    %106 = arith.addf %105, %103 : vector<6x32xf32>
    %107 = vector.extract_strided_slice %99 {offsets = [0, 96], sizes = [6, 32], strides = [1, 1]} : vector<6x128xf32> to vector<6x32xf32>
    %108 = math.tanh %106 : vector<6x32xf32>
    %109 = arith.mulf %107, %108 : vector<6x32xf32>
    %110 = tpu.concatenate %109, %92 in 1 : vector<6x32xf32>, vector<6x32xf32> -> vector<6x64xf32>
    %cst_22 = arith.constant dense<0.000000e+00> : vector<6x128xf32>
    %111 = tpu.matmul %110, %2, %cst_22 {dimension_numbers = #tpu.dot_dimension_numbers<[1], [0], [0], [1], [0, 0, 1, 1], [], []>} : vector<6x64xf32>, vector<64x128xf32>, vector<6x128xf32> -> vector<6x128xf32>
    %112 = arith.addf %111, %10 : vector<6x128xf32>
    %113 = arith.negf %112 : vector<6x128xf32>
    %114 = math.exp %113 : vector<6x128xf32>
    %cst_23 = arith.constant 1.000000e+00 : f32
    %115 = vector.broadcast %cst_23 : f32 to vector<6x128xf32>
    %116 = arith.addf %115, %114 : vector<6x128xf32>
    %117 = arith.divf %115, %116 : vector<6x128xf32>
    %118 = math.tanh %112 : vector<6x128xf32>
    %119 = vector.extract_strided_slice %117 {offsets = [0, 0], sizes = [6, 32], strides = [1, 1]} : vector<6x128xf32> to vector<6x32xf32>
    %120 = vector.extract_strided_slice %118 {offsets = [0, 64], sizes = [6, 32], strides = [1, 1]} : vector<6x128xf32> to vector<6x32xf32>
    %121 = arith.mulf %119, %120 : vector<6x32xf32>
    %122 = vector.extract_strided_slice %117 {offsets = [0, 32], sizes = [6, 32], strides = [1, 1]} : vector<6x128xf32> to vector<6x32xf32>
    %123 = arith.mulf %122, %89 : vector<6x32xf32>
    %124 = arith.addf %123, %121 : vector<6x32xf32>
    %125 = vector.extract_strided_slice %117 {offsets = [0, 96], sizes = [6, 32], strides = [1, 1]} : vector<6x128xf32> to vector<6x32xf32>
    %126 = math.tanh %124 : vector<6x32xf32>
    %127 = arith.mulf %125, %126 : vector<6x32xf32>
    %cst_24 = arith.constant dense<0.000000e+00> : vector<6x128xf32>
    %128 = tpu.matmul %109, %0, %cst_24 {dimension_numbers = #tpu.dot_dimension_numbers<[1], [0], [0], [1], [0, 0, 1, 1], [], []>} : vector<6x32xf32>, vector<32x128xf32>, vector<6x128xf32> -> vector<6x128xf32>
    %129 = arith.addf %41, %128 : vector<6x128xf32>
    %130 = arith.negf %129 : vector<6x128xf32>
    %131 = math.exp %130 : vector<6x128xf32>
    %cst_25 = arith.constant 1.000000e+00 : f32
    %132 = vector.broadcast %cst_25 : f32 to vector<6x128xf32>
    %133 = arith.addf %132, %131 : vector<6x128xf32>
    %134 = arith.divf %132, %133 : vector<6x128xf32>
    %135 = math.tanh %129 : vector<6x128xf32>
    %136 = vector.extract_strided_slice %134 {offsets = [0, 0], sizes = [6, 32], strides = [1, 1]} : vector<6x128xf32> to vector<6x32xf32>
    %137 = vector.extract_strided_slice %135 {offsets = [0, 64], sizes = [6, 32], strides = [1, 1]} : vector<6x128xf32> to vector<6x32xf32>
    %138 = arith.mulf %136, %137 : vector<6x32xf32>
    %139 = vector.extract_strided_slice %134 {offsets = [0, 32], sizes = [6, 32], strides = [1, 1]} : vector<6x128xf32> to vector<6x32xf32>
    %140 = arith.mulf %139, %106 : vector<6x32xf32>
    %141 = arith.addf %140, %138 : vector<6x32xf32>
    %142 = vector.extract_strided_slice %134 {offsets = [0, 96], sizes = [6, 32], strides = [1, 1]} : vector<6x128xf32> to vector<6x32xf32>
    %143 = math.tanh %141 : vector<6x32xf32>
    %144 = arith.mulf %142, %143 : vector<6x32xf32>
    %145 = tpu.concatenate %144, %127 in 1 : vector<6x32xf32>, vector<6x32xf32> -> vector<6x64xf32>
    %cst_26 = arith.constant dense<0.000000e+00> : vector<6x128xf32>
    %146 = tpu.matmul %145, %2, %cst_26 {dimension_numbers = #tpu.dot_dimension_numbers<[1], [0], [0], [1], [0, 0, 1, 1], [], []>} : vector<6x64xf32>, vector<64x128xf32>, vector<6x128xf32> -> vector<6x128xf32>
    %147 = arith.addf %146, %10 : vector<6x128xf32>
    %148 = arith.negf %147 : vector<6x128xf32>
    %149 = math.exp %148 : vector<6x128xf32>
    %cst_27 = arith.constant 1.000000e+00 : f32
    %150 = vector.broadcast %cst_27 : f32 to vector<6x128xf32>
    %151 = arith.addf %150, %149 : vector<6x128xf32>
    %152 = arith.divf %150, %151 : vector<6x128xf32>
    %153 = math.tanh %147 : vector<6x128xf32>
    %154 = vector.extract_strided_slice %152 {offsets = [0, 0], sizes = [6, 32], strides = [1, 1]} : vector<6x128xf32> to vector<6x32xf32>
    %155 = vector.extract_strided_slice %153 {offsets = [0, 64], sizes = [6, 32], strides = [1, 1]} : vector<6x128xf32> to vector<6x32xf32>
    %156 = arith.mulf %154, %155 : vector<6x32xf32>
    %157 = vector.extract_strided_slice %152 {offsets = [0, 32], sizes = [6, 32], strides = [1, 1]} : vector<6x128xf32> to vector<6x32xf32>
    %158 = arith.mulf %157, %124 : vector<6x32xf32>
    %159 = arith.addf %158, %156 : vector<6x32xf32>
    %160 = vector.extract_strided_slice %152 {offsets = [0, 96], sizes = [6, 32], strides = [1, 1]} : vector<6x128xf32> to vector<6x32xf32>
    %161 = math.tanh %159 : vector<6x32xf32>
    %162 = arith.mulf %160, %161 : vector<6x32xf32>
    %cst_28 = arith.constant dense<0.000000e+00> : vector<6x128xf32>
    %163 = tpu.matmul %144, %0, %cst_28 {dimension_numbers = #tpu.dot_dimension_numbers<[1], [0], [0], [1], [0, 0, 1, 1], [], []>} : vector<6x32xf32>, vector<32x128xf32>, vector<6x128xf32> -> vector<6x128xf32>
    %164 = arith.addf %46, %163 : vector<6x128xf32>
    %165 = arith.negf %164 : vector<6x128xf32>
    %166 = math.exp %165 : vector<6x128xf32>
    %cst_29 = arith.constant 1.000000e+00 : f32
    %167 = vector.broadcast %cst_29 : f32 to vector<6x128xf32>
    %168 = arith.addf %167, %166 : vector<6x128xf32>
    %169 = arith.divf %167, %168 : vector<6x128xf32>
    %170 = math.tanh %164 : vector<6x128xf32>
    %171 = vector.extract_strided_slice %169 {offsets = [0, 0], sizes = [6, 32], strides = [1, 1]} : vector<6x128xf32> to vector<6x32xf32>
    %172 = vector.extract_strided_slice %170 {offsets = [0, 64], sizes = [6, 32], strides = [1, 1]} : vector<6x128xf32> to vector<6x32xf32>
    %173 = arith.mulf %171, %172 : vector<6x32xf32>
    %174 = vector.extract_strided_slice %169 {offsets = [0, 32], sizes = [6, 32], strides = [1, 1]} : vector<6x128xf32> to vector<6x32xf32>
    %175 = arith.mulf %174, %141 : vector<6x32xf32>
    %176 = arith.addf %175, %173 : vector<6x32xf32>
    %177 = vector.extract_strided_slice %169 {offsets = [0, 96], sizes = [6, 32], strides = [1, 1]} : vector<6x128xf32> to vector<6x32xf32>
    %178 = math.tanh %176 : vector<6x32xf32>
    %179 = arith.mulf %177, %178 : vector<6x32xf32>
    %180 = tpu.concatenate %179, %162 in 1 : vector<6x32xf32>, vector<6x32xf32> -> vector<6x64xf32>
    %cst_30 = arith.constant dense<0.000000e+00> : vector<6x128xf32>
    %181 = tpu.matmul %180, %2, %cst_30 {dimension_numbers = #tpu.dot_dimension_numbers<[1], [0], [0], [1], [0, 0, 1, 1], [], []>} : vector<6x64xf32>, vector<64x128xf32>, vector<6x128xf32> -> vector<6x128xf32>
    %182 = arith.addf %181, %10 : vector<6x128xf32>
    %183 = arith.negf %182 : vector<6x128xf32>
    %184 = math.exp %183 : vector<6x128xf32>
    %cst_31 = arith.constant 1.000000e+00 : f32
    %185 = vector.broadcast %cst_31 : f32 to vector<6x128xf32>
    %186 = arith.addf %185, %184 : vector<6x128xf32>
    %187 = arith.divf %185, %186 : vector<6x128xf32>
    %188 = math.tanh %182 : vector<6x128xf32>
    %189 = vector.extract_strided_slice %187 {offsets = [0, 0], sizes = [6, 32], strides = [1, 1]} : vector<6x128xf32> to vector<6x32xf32>
    %190 = vector.extract_strided_slice %188 {offsets = [0, 64], sizes = [6, 32], strides = [1, 1]} : vector<6x128xf32> to vector<6x32xf32>
    %191 = arith.mulf %189, %190 : vector<6x32xf32>
    %192 = vector.extract_strided_slice %187 {offsets = [0, 32], sizes = [6, 32], strides = [1, 1]} : vector<6x128xf32> to vector<6x32xf32>
    %193 = arith.mulf %192, %159 : vector<6x32xf32>
    %194 = arith.addf %193, %191 : vector<6x32xf32>
    %195 = vector.extract_strided_slice %187 {offsets = [0, 96], sizes = [6, 32], strides = [1, 1]} : vector<6x128xf32> to vector<6x32xf32>
    %196 = math.tanh %194 : vector<6x32xf32>
    %197 = arith.mulf %195, %196 : vector<6x32xf32>
    %cst_32 = arith.constant dense<0.000000e+00> : vector<6x128xf32>
    %198 = tpu.matmul %179, %0, %cst_32 {dimension_numbers = #tpu.dot_dimension_numbers<[1], [0], [0], [1], [0, 0, 1, 1], [], []>} : vector<6x32xf32>, vector<32x128xf32>, vector<6x128xf32> -> vector<6x128xf32>
    %199 = arith.addf %51, %198 : vector<6x128xf32>
    %200 = arith.negf %199 : vector<6x128xf32>
    %201 = math.exp %200 : vector<6x128xf32>
    %cst_33 = arith.constant 1.000000e+00 : f32
    %202 = vector.broadcast %cst_33 : f32 to vector<6x128xf32>
    %203 = arith.addf %202, %201 : vector<6x128xf32>
    %204 = arith.divf %202, %203 : vector<6x128xf32>
    %205 = math.tanh %199 : vector<6x128xf32>
    %206 = vector.extract_strided_slice %204 {offsets = [0, 0], sizes = [6, 32], strides = [1, 1]} : vector<6x128xf32> to vector<6x32xf32>
    %207 = vector.extract_strided_slice %205 {offsets = [0, 64], sizes = [6, 32], strides = [1, 1]} : vector<6x128xf32> to vector<6x32xf32>
    %208 = arith.mulf %206, %207 : vector<6x32xf32>
    %209 = vector.extract_strided_slice %204 {offsets = [0, 32], sizes = [6, 32], strides = [1, 1]} : vector<6x128xf32> to vector<6x32xf32>
    %210 = arith.mulf %209, %176 : vector<6x32xf32>
    %211 = arith.addf %210, %208 : vector<6x32xf32>
    %212 = vector.extract_strided_slice %204 {offsets = [0, 96], sizes = [6, 32], strides = [1, 1]} : vector<6x128xf32> to vector<6x32xf32>
    %213 = math.tanh %211 : vector<6x32xf32>
    %214 = arith.mulf %212, %213 : vector<6x32xf32>
    %215 = tpu.concatenate %214, %197 in 1 : vector<6x32xf32>, vector<6x32xf32> -> vector<6x64xf32>
    %cst_34 = arith.constant dense<0.000000e+00> : vector<6x128xf32>
    %216 = tpu.matmul %215, %2, %cst_34 {dimension_numbers = #tpu.dot_dimension_numbers<[1], [0], [0], [1], [0, 0, 1, 1], [], []>} : vector<6x64xf32>, vector<64x128xf32>, vector<6x128xf32> -> vector<6x128xf32>
    %217 = arith.addf %216, %10 : vector<6x128xf32>
    %218 = arith.negf %217 : vector<6x128xf32>
    %219 = math.exp %218 : vector<6x128xf32>
    %cst_35 = arith.constant 1.000000e+00 : f32
    %220 = vector.broadcast %cst_35 : f32 to vector<6x128xf32>
    %221 = arith.addf %220, %219 : vector<6x128xf32>
    %222 = arith.divf %220, %221 : vector<6x128xf32>
    %223 = math.tanh %217 : vector<6x128xf32>
    %224 = vector.extract_strided_slice %222 {offsets = [0, 0], sizes = [6, 32], strides = [1, 1]} : vector<6x128xf32> to vector<6x32xf32>
    %225 = vector.extract_strided_slice %223 {offsets = [0, 64], sizes = [6, 32], strides = [1, 1]} : vector<6x128xf32> to vector<6x32xf32>
    %226 = arith.mulf %224, %225 : vector<6x32xf32>
    %227 = vector.extract_strided_slice %222 {offsets = [0, 32], sizes = [6, 32], strides = [1, 1]} : vector<6x128xf32> to vector<6x32xf32>
    %228 = arith.mulf %227, %194 : vector<6x32xf32>
    %229 = arith.addf %228, %226 : vector<6x32xf32>
    %230 = vector.extract_strided_slice %222 {offsets = [0, 96], sizes = [6, 32], strides = [1, 1]} : vector<6x128xf32> to vector<6x32xf32>
    %231 = math.tanh %229 : vector<6x32xf32>
    %232 = arith.mulf %230, %231 : vector<6x32xf32>
    %cst_36 = arith.constant dense<0.000000e+00> : vector<6x128xf32>
    %233 = tpu.matmul %214, %0, %cst_36 {dimension_numbers = #tpu.dot_dimension_numbers<[1], [0], [0], [1], [0, 0, 1, 1], [], []>} : vector<6x32xf32>, vector<32x128xf32>, vector<6x128xf32> -> vector<6x128xf32>
    %234 = arith.addf %56, %233 : vector<6x128xf32>
    %235 = arith.negf %234 : vector<6x128xf32>
    %236 = math.exp %235 : vector<6x128xf32>
    %cst_37 = arith.constant 1.000000e+00 : f32
    %237 = vector.broadcast %cst_37 : f32 to vector<6x128xf32>
    %238 = arith.addf %237, %236 : vector<6x128xf32>
    %239 = arith.divf %237, %238 : vector<6x128xf32>
    %240 = math.tanh %234 : vector<6x128xf32>
    %241 = vector.extract_strided_slice %239 {offsets = [0, 0], sizes = [6, 32], strides = [1, 1]} : vector<6x128xf32> to vector<6x32xf32>
    %242 = vector.extract_strided_slice %240 {offsets = [0, 64], sizes = [6, 32], strides = [1, 1]} : vector<6x128xf32> to vector<6x32xf32>
    %243 = arith.mulf %241, %242 : vector<6x32xf32>
    %244 = vector.extract_strided_slice %239 {offsets = [0, 32], sizes = [6, 32], strides = [1, 1]} : vector<6x128xf32> to vector<6x32xf32>
    %245 = arith.mulf %244, %211 : vector<6x32xf32>
    %246 = arith.addf %245, %243 : vector<6x32xf32>
    %247 = vector.extract_strided_slice %239 {offsets = [0, 96], sizes = [6, 32], strides = [1, 1]} : vector<6x128xf32> to vector<6x32xf32>
    %248 = math.tanh %246 : vector<6x32xf32>
    %249 = arith.mulf %247, %248 : vector<6x32xf32>
    %250 = tpu.concatenate %249, %232 in 1 : vector<6x32xf32>, vector<6x32xf32> -> vector<6x64xf32>
    %cst_38 = arith.constant dense<0.000000e+00> : vector<6x128xf32>
    %251 = tpu.matmul %250, %2, %cst_38 {dimension_numbers = #tpu.dot_dimension_numbers<[1], [0], [0], [1], [0, 0, 1, 1], [], []>} : vector<6x64xf32>, vector<64x128xf32>, vector<6x128xf32> -> vector<6x128xf32>
    %252 = arith.addf %251, %10 : vector<6x128xf32>
    %253 = arith.negf %252 : vector<6x128xf32>
    %254 = math.exp %253 : vector<6x128xf32>
    %cst_39 = arith.constant 1.000000e+00 : f32
    %255 = vector.broadcast %cst_39 : f32 to vector<6x128xf32>
    %256 = arith.addf %255, %254 : vector<6x128xf32>
    %257 = arith.divf %255, %256 : vector<6x128xf32>
    %258 = math.tanh %252 : vector<6x128xf32>
    %259 = vector.extract_strided_slice %257 {offsets = [0, 0], sizes = [6, 32], strides = [1, 1]} : vector<6x128xf32> to vector<6x32xf32>
    %260 = vector.extract_strided_slice %258 {offsets = [0, 64], sizes = [6, 32], strides = [1, 1]} : vector<6x128xf32> to vector<6x32xf32>
    %261 = arith.mulf %259, %260 : vector<6x32xf32>
    %262 = vector.extract_strided_slice %257 {offsets = [0, 32], sizes = [6, 32], strides = [1, 1]} : vector<6x128xf32> to vector<6x32xf32>
    %263 = arith.mulf %262, %229 : vector<6x32xf32>
    %264 = arith.addf %263, %261 : vector<6x32xf32>
    %265 = vector.extract_strided_slice %257 {offsets = [0, 96], sizes = [6, 32], strides = [1, 1]} : vector<6x128xf32> to vector<6x32xf32>
    %266 = math.tanh %264 : vector<6x32xf32>
    %267 = arith.mulf %265, %266 : vector<6x32xf32>
    %cst_40 = arith.constant dense<0.000000e+00> : vector<6x128xf32>
    %268 = tpu.matmul %249, %0, %cst_40 {dimension_numbers = #tpu.dot_dimension_numbers<[1], [0], [0], [1], [0, 0, 1, 1], [], []>} : vector<6x32xf32>, vector<32x128xf32>, vector<6x128xf32> -> vector<6x128xf32>
    %269 = arith.addf %61, %268 : vector<6x128xf32>
    %270 = arith.negf %269 : vector<6x128xf32>
    %271 = math.exp %270 : vector<6x128xf32>
    %cst_41 = arith.constant 1.000000e+00 : f32
    %272 = vector.broadcast %cst_41 : f32 to vector<6x128xf32>
    %273 = arith.addf %272, %271 : vector<6x128xf32>
    %274 = arith.divf %272, %273 : vector<6x128xf32>
    %275 = math.tanh %269 : vector<6x128xf32>
    %276 = vector.extract_strided_slice %274 {offsets = [0, 0], sizes = [6, 32], strides = [1, 1]} : vector<6x128xf32> to vector<6x32xf32>
    %277 = vector.extract_strided_slice %275 {offsets = [0, 64], sizes = [6, 32], strides = [1, 1]} : vector<6x128xf32> to vector<6x32xf32>
    %278 = arith.mulf %276, %277 : vector<6x32xf32>
    %279 = vector.extract_strided_slice %274 {offsets = [0, 32], sizes = [6, 32], strides = [1, 1]} : vector<6x128xf32> to vector<6x32xf32>
    %280 = arith.mulf %279, %246 : vector<6x32xf32>
    %281 = arith.addf %280, %278 : vector<6x32xf32>
    %282 = vector.extract_strided_slice %274 {offsets = [0, 96], sizes = [6, 32], strides = [1, 1]} : vector<6x128xf32> to vector<6x32xf32>
    %283 = math.tanh %281 : vector<6x32xf32>
    %284 = arith.mulf %282, %283 : vector<6x32xf32>
    %285 = tpu.concatenate %284, %267 in 1 : vector<6x32xf32>, vector<6x32xf32> -> vector<6x64xf32>
    %cst_42 = arith.constant dense<0.000000e+00> : vector<6x128xf32>
    %286 = tpu.matmul %285, %2, %cst_42 {dimension_numbers = #tpu.dot_dimension_numbers<[1], [0], [0], [1], [0, 0, 1, 1], [], []>} : vector<6x64xf32>, vector<64x128xf32>, vector<6x128xf32> -> vector<6x128xf32>
    %287 = arith.addf %286, %10 : vector<6x128xf32>
    %288 = arith.negf %287 : vector<6x128xf32>
    %289 = math.exp %288 : vector<6x128xf32>
    %cst_43 = arith.constant 1.000000e+00 : f32
    %290 = vector.broadcast %cst_43 : f32 to vector<6x128xf32>
    %291 = arith.addf %290, %289 : vector<6x128xf32>
    %292 = arith.divf %290, %291 : vector<6x128xf32>
    %293 = math.tanh %287 : vector<6x128xf32>
    %294 = vector.extract_strided_slice %292 {offsets = [0, 0], sizes = [6, 32], strides = [1, 1]} : vector<6x128xf32> to vector<6x32xf32>
    %295 = vector.extract_strided_slice %293 {offsets = [0, 64], sizes = [6, 32], strides = [1, 1]} : vector<6x128xf32> to vector<6x32xf32>
    %296 = arith.mulf %294, %295 : vector<6x32xf32>
    %297 = vector.extract_strided_slice %292 {offsets = [0, 32], sizes = [6, 32], strides = [1, 1]} : vector<6x128xf32> to vector<6x32xf32>
    %298 = arith.mulf %297, %264 : vector<6x32xf32>
    %299 = arith.addf %298, %296 : vector<6x32xf32>
    %300 = vector.extract_strided_slice %292 {offsets = [0, 96], sizes = [6, 32], strides = [1, 1]} : vector<6x128xf32> to vector<6x32xf32>
    %301 = math.tanh %299 : vector<6x32xf32>
    %302 = arith.mulf %300, %301 : vector<6x32xf32>
    %cst_44 = arith.constant dense<0.000000e+00> : vector<6x128xf32>
    %303 = tpu.matmul %284, %0, %cst_44 {dimension_numbers = #tpu.dot_dimension_numbers<[1], [0], [0], [1], [0, 0, 1, 1], [], []>} : vector<6x32xf32>, vector<32x128xf32>, vector<6x128xf32> -> vector<6x128xf32>
    %304 = arith.addf %66, %303 : vector<6x128xf32>
    %305 = arith.negf %304 : vector<6x128xf32>
    %306 = math.exp %305 : vector<6x128xf32>
    %cst_45 = arith.constant 1.000000e+00 : f32
    %307 = vector.broadcast %cst_45 : f32 to vector<6x128xf32>
    %308 = arith.addf %307, %306 : vector<6x128xf32>
    %309 = arith.divf %307, %308 : vector<6x128xf32>
    %310 = math.tanh %304 : vector<6x128xf32>
    %311 = vector.extract_strided_slice %309 {offsets = [0, 0], sizes = [6, 32], strides = [1, 1]} : vector<6x128xf32> to vector<6x32xf32>
    %312 = vector.extract_strided_slice %310 {offsets = [0, 64], sizes = [6, 32], strides = [1, 1]} : vector<6x128xf32> to vector<6x32xf32>
    %313 = arith.mulf %311, %312 : vector<6x32xf32>
    %314 = vector.extract_strided_slice %309 {offsets = [0, 32], sizes = [6, 32], strides = [1, 1]} : vector<6x128xf32> to vector<6x32xf32>
    %315 = arith.mulf %314, %281 : vector<6x32xf32>
    %316 = arith.addf %315, %313 : vector<6x32xf32>
    %317 = vector.extract_strided_slice %309 {offsets = [0, 96], sizes = [6, 32], strides = [1, 1]} : vector<6x128xf32> to vector<6x32xf32>
    %318 = math.tanh %316 : vector<6x32xf32>
    %319 = arith.mulf %317, %318 : vector<6x32xf32>
    %320 = tpu.concatenate %319, %302 in 1 : vector<6x32xf32>, vector<6x32xf32> -> vector<6x64xf32>
    %cst_46 = arith.constant dense<0.000000e+00> : vector<6x128xf32>
    %321 = tpu.matmul %320, %2, %cst_46 {dimension_numbers = #tpu.dot_dimension_numbers<[1], [0], [0], [1], [0, 0, 1, 1], [], []>} : vector<6x64xf32>, vector<64x128xf32>, vector<6x128xf32> -> vector<6x128xf32>
    %322 = arith.addf %321, %10 : vector<6x128xf32>
    %323 = arith.negf %322 : vector<6x128xf32>
    %324 = math.exp %323 : vector<6x128xf32>
    %cst_47 = arith.constant 1.000000e+00 : f32
    %325 = vector.broadcast %cst_47 : f32 to vector<6x128xf32>
    %326 = arith.addf %325, %324 : vector<6x128xf32>
    %327 = arith.divf %325, %326 : vector<6x128xf32>
    %328 = math.tanh %322 : vector<6x128xf32>
    %329 = vector.extract_strided_slice %327 {offsets = [0, 0], sizes = [6, 32], strides = [1, 1]} : vector<6x128xf32> to vector<6x32xf32>
    %330 = vector.extract_strided_slice %328 {offsets = [0, 64], sizes = [6, 32], strides = [1, 1]} : vector<6x128xf32> to vector<6x32xf32>
    %331 = arith.mulf %329, %330 : vector<6x32xf32>
    %332 = vector.extract_strided_slice %327 {offsets = [0, 32], sizes = [6, 32], strides = [1, 1]} : vector<6x128xf32> to vector<6x32xf32>
    %333 = arith.mulf %332, %299 : vector<6x32xf32>
    %334 = arith.addf %333, %331 : vector<6x32xf32>
    %335 = vector.extract_strided_slice %327 {offsets = [0, 96], sizes = [6, 32], strides = [1, 1]} : vector<6x128xf32> to vector<6x32xf32>
    %336 = math.tanh %334 : vector<6x32xf32>
    %337 = arith.mulf %335, %336 : vector<6x32xf32>
    %cst_48 = arith.constant dense<0.000000e+00> : vector<6x128xf32>
    %338 = tpu.matmul %319, %3, %cst_48 {dimension_numbers = #tpu.dot_dimension_numbers<[1], [0], [0], [1], [0, 0, 1, 1], [], []>} : vector<6x32xf32>, vector<32x128xf32>, vector<6x128xf32> -> vector<6x128xf32>
    %339 = arith.addf %338, %13 : vector<6x128xf32>
    %340 = arith.negf %339 : vector<6x128xf32>
    %341 = math.exp %340 : vector<6x128xf32>
    %cst_49 = arith.constant 1.000000e+00 : f32
    %342 = vector.broadcast %cst_49 : f32 to vector<6x128xf32>
    %343 = arith.addf %342, %341 : vector<6x128xf32>
    %344 = arith.divf %342, %343 : vector<6x128xf32>
    %345 = math.tanh %339 : vector<6x128xf32>
    %346 = vector.extract_strided_slice %344 {offsets = [0, 0], sizes = [6, 32], strides = [1, 1]} : vector<6x128xf32> to vector<6x32xf32>
    %347 = vector.extract_strided_slice %345 {offsets = [0, 64], sizes = [6, 32], strides = [1, 1]} : vector<6x128xf32> to vector<6x32xf32>
    %348 = arith.mulf %346, %347 : vector<6x32xf32>
    %349 = vector.extract_strided_slice %344 {offsets = [0, 32], sizes = [6, 32], strides = [1, 1]} : vector<6x128xf32> to vector<6x32xf32>
    %350 = arith.mulf %349, %316 : vector<6x32xf32>
    %351 = arith.addf %350, %348 : vector<6x32xf32>
    %352 = vector.extract_strided_slice %344 {offsets = [0, 96], sizes = [6, 32], strides = [1, 1]} : vector<6x128xf32> to vector<6x32xf32>
    %353 = math.tanh %351 : vector<6x32xf32>
    %354 = arith.mulf %352, %353 : vector<6x32xf32>
    %355 = tpu.concatenate %354, %337 in 1 : vector<6x32xf32>, vector<6x32xf32> -> vector<6x64xf32>
    %cst_50 = arith.constant dense<0.000000e+00> : vector<6x128xf32>
    %356 = tpu.matmul %355, %5, %cst_50 {dimension_numbers = #tpu.dot_dimension_numbers<[1], [0], [0], [1], [0, 0, 1, 1], [], []>} : vector<6x64xf32>, vector<64x128xf32>, vector<6x128xf32> -> vector<6x128xf32>
    %357 = arith.addf %356, %19 : vector<6x128xf32>
    %358 = arith.negf %357 : vector<6x128xf32>
    %359 = math.exp %358 : vector<6x128xf32>
    %cst_51 = arith.constant 1.000000e+00 : f32
    %360 = vector.broadcast %cst_51 : f32 to vector<6x128xf32>
    %361 = arith.addf %360, %359 : vector<6x128xf32>
    %362 = arith.divf %360, %361 : vector<6x128xf32>
    %363 = math.tanh %357 : vector<6x128xf32>
    %364 = vector.extract_strided_slice %362 {offsets = [0, 0], sizes = [6, 32], strides = [1, 1]} : vector<6x128xf32> to vector<6x32xf32>
    %365 = vector.extract_strided_slice %363 {offsets = [0, 64], sizes = [6, 32], strides = [1, 1]} : vector<6x128xf32> to vector<6x32xf32>
    %366 = arith.mulf %364, %365 : vector<6x32xf32>
    %367 = vector.extract_strided_slice %362 {offsets = [0, 32], sizes = [6, 32], strides = [1, 1]} : vector<6x128xf32> to vector<6x32xf32>
    %368 = arith.mulf %367, %334 : vector<6x32xf32>
    %369 = arith.addf %368, %366 : vector<6x32xf32>
    %370 = vector.extract_strided_slice %362 {offsets = [0, 96], sizes = [6, 32], strides = [1, 1]} : vector<6x128xf32> to vector<6x32xf32>
    %371 = math.tanh %369 : vector<6x32xf32>
    %372 = arith.mulf %370, %371 : vector<6x32xf32>
    %373 = tpu.concatenate %354, %372 in 1 : vector<6x32xf32>, vector<6x32xf32> -> vector<6x64xf32>
    %cst_52 = arith.constant dense<0.000000e+00> : vector<6x128xf32>
    %374 = tpu.matmul %373, %4, %cst_52 {dimension_numbers = #tpu.dot_dimension_numbers<[1], [0], [0], [1], [0, 0, 1, 1], [], []>} : vector<6x64xf32>, vector<64x128xf32>, vector<6x128xf32> -> vector<6x128xf32>
    %375 = arith.addf %374, %16 : vector<6x128xf32>
    %376 = arith.negf %375 : vector<6x128xf32>
    %377 = math.exp %376 : vector<6x128xf32>
    %cst_53 = arith.constant 1.000000e+00 : f32
    %378 = vector.broadcast %cst_53 : f32 to vector<6x128xf32>
    %379 = arith.addf %378, %377 : vector<6x128xf32>
    %380 = arith.divf %378, %379 : vector<6x128xf32>
    %381 = math.tanh %375 : vector<6x128xf32>
    %382 = vector.extract_strided_slice %380 {offsets = [0, 0], sizes = [6, 32], strides = [1, 1]} : vector<6x128xf32> to vector<6x32xf32>
    %383 = vector.extract_strided_slice %381 {offsets = [0, 64], sizes = [6, 32], strides = [1, 1]} : vector<6x128xf32> to vector<6x32xf32>
    %384 = arith.mulf %382, %383 : vector<6x32xf32>
    %385 = vector.extract_strided_slice %380 {offsets = [0, 32], sizes = [6, 32], strides = [1, 1]} : vector<6x128xf32> to vector<6x32xf32>
    %386 = arith.mulf %385, %351 : vector<6x32xf32>
    %387 = arith.addf %386, %384 : vector<6x32xf32>
    %388 = vector.extract_strided_slice %380 {offsets = [0, 96], sizes = [6, 32], strides = [1, 1]} : vector<6x128xf32> to vector<6x32xf32>
    %389 = math.tanh %387 : vector<6x32xf32>
    %390 = arith.mulf %388, %389 : vector<6x32xf32>
    %391 = tpu.concatenate %390, %372 in 1 : vector<6x32xf32>, vector<6x32xf32> -> vector<6x64xf32>
    %cst_54 = arith.constant dense<0.000000e+00> : vector<6x128xf32>
    %392 = tpu.matmul %391, %5, %cst_54 {dimension_numbers = #tpu.dot_dimension_numbers<[1], [0], [0], [1], [0, 0, 1, 1], [], []>} : vector<6x64xf32>, vector<64x128xf32>, vector<6x128xf32> -> vector<6x128xf32>
    %393 = arith.addf %392, %19 : vector<6x128xf32>
    %394 = arith.negf %393 : vector<6x128xf32>
    %395 = math.exp %394 : vector<6x128xf32>
    %cst_55 = arith.constant 1.000000e+00 : f32
    %396 = vector.broadcast %cst_55 : f32 to vector<6x128xf32>
    %397 = arith.addf %396, %395 : vector<6x128xf32>
    %398 = arith.divf %396, %397 : vector<6x128xf32>
    %399 = math.tanh %393 : vector<6x128xf32>
    %400 = vector.extract_strided_slice %398 {offsets = [0, 0], sizes = [6, 32], strides = [1, 1]} : vector<6x128xf32> to vector<6x32xf32>
    %401 = vector.extract_strided_slice %399 {offsets = [0, 64], sizes = [6, 32], strides = [1, 1]} : vector<6x128xf32> to vector<6x32xf32>
    %402 = arith.mulf %400, %401 : vector<6x32xf32>
    %403 = vector.extract_strided_slice %398 {offsets = [0, 32], sizes = [6, 32], strides = [1, 1]} : vector<6x128xf32> to vector<6x32xf32>
    %404 = arith.mulf %403, %369 : vector<6x32xf32>
    %405 = arith.addf %404, %402 : vector<6x32xf32>
    %406 = vector.extract_strided_slice %398 {offsets = [0, 96], sizes = [6, 32], strides = [1, 1]} : vector<6x128xf32> to vector<6x32xf32>
    %407 = math.tanh %405 : vector<6x32xf32>
    %408 = arith.mulf %406, %407 : vector<6x32xf32>
    %409 = tpu.concatenate %390, %408 in 1 : vector<6x32xf32>, vector<6x32xf32> -> vector<6x64xf32>
    %cst_56 = arith.constant dense<0.000000e+00> : vector<6x128xf32>
    %410 = tpu.matmul %409, %4, %cst_56 {dimension_numbers = #tpu.dot_dimension_numbers<[1], [0], [0], [1], [0, 0, 1, 1], [], []>} : vector<6x64xf32>, vector<64x128xf32>, vector<6x128xf32> -> vector<6x128xf32>
    %411 = arith.addf %410, %16 : vector<6x128xf32>
    %412 = arith.negf %411 : vector<6x128xf32>
    %413 = math.exp %412 : vector<6x128xf32>
    %cst_57 = arith.constant 1.000000e+00 : f32
    %414 = vector.broadcast %cst_57 : f32 to vector<6x128xf32>
    %415 = arith.addf %414, %413 : vector<6x128xf32>
    %416 = arith.divf %414, %415 : vector<6x128xf32>
    %417 = math.tanh %411 : vector<6x128xf32>
    %418 = vector.extract_strided_slice %416 {offsets = [0, 0], sizes = [6, 32], strides = [1, 1]} : vector<6x128xf32> to vector<6x32xf32>
    %419 = vector.extract_strided_slice %417 {offsets = [0, 64], sizes = [6, 32], strides = [1, 1]} : vector<6x128xf32> to vector<6x32xf32>
    %420 = arith.mulf %418, %419 : vector<6x32xf32>
    %421 = vector.extract_strided_slice %416 {offsets = [0, 32], sizes = [6, 32], strides = [1, 1]} : vector<6x128xf32> to vector<6x32xf32>
    %422 = arith.mulf %421, %387 : vector<6x32xf32>
    %423 = arith.addf %422, %420 : vector<6x32xf32>
    %424 = vector.extract_strided_slice %416 {offsets = [0, 96], sizes = [6, 32], strides = [1, 1]} : vector<6x128xf32> to vector<6x32xf32>
    %425 = math.tanh %423 : vector<6x32xf32>
    %426 = arith.mulf %424, %425 : vector<6x32xf32>
    %427 = tpu.concatenate %426, %408 in 1 : vector<6x32xf32>, vector<6x32xf32> -> vector<6x64xf32>
    %cst_58 = arith.constant dense<0.000000e+00> : vector<6x128xf32>
    %428 = tpu.matmul %427, %5, %cst_58 {dimension_numbers = #tpu.dot_dimension_numbers<[1], [0], [0], [1], [0, 0, 1, 1], [], []>} : vector<6x64xf32>, vector<64x128xf32>, vector<6x128xf32> -> vector<6x128xf32>
    %429 = arith.addf %428, %19 : vector<6x128xf32>
    %430 = arith.negf %429 : vector<6x128xf32>
    %431 = math.exp %430 : vector<6x128xf32>
    %cst_59 = arith.constant 1.000000e+00 : f32
    %432 = vector.broadcast %cst_59 : f32 to vector<6x128xf32>
    %433 = arith.addf %432, %431 : vector<6x128xf32>
    %434 = arith.divf %432, %433 : vector<6x128xf32>
    %435 = math.tanh %429 : vector<6x128xf32>
    %436 = vector.extract_strided_slice %434 {offsets = [0, 0], sizes = [6, 32], strides = [1, 1]} : vector<6x128xf32> to vector<6x32xf32>
    %437 = vector.extract_strided_slice %435 {offsets = [0, 64], sizes = [6, 32], strides = [1, 1]} : vector<6x128xf32> to vector<6x32xf32>
    %438 = arith.mulf %436, %437 : vector<6x32xf32>
    %439 = vector.extract_strided_slice %434 {offsets = [0, 32], sizes = [6, 32], strides = [1, 1]} : vector<6x128xf32> to vector<6x32xf32>
    %440 = arith.mulf %439, %405 : vector<6x32xf32>
    %441 = arith.addf %440, %438 : vector<6x32xf32>
    %442 = vector.extract_strided_slice %434 {offsets = [0, 96], sizes = [6, 32], strides = [1, 1]} : vector<6x128xf32> to vector<6x32xf32>
    %443 = math.tanh %441 : vector<6x32xf32>
    %444 = arith.mulf %442, %443 : vector<6x32xf32>
    %445 = tpu.concatenate %426, %444 in 1 : vector<6x32xf32>, vector<6x32xf32> -> vector<6x64xf32>
    %cst_60 = arith.constant dense<0.000000e+00> : vector<6x128xf32>
    %446 = tpu.matmul %445, %4, %cst_60 {dimension_numbers = #tpu.dot_dimension_numbers<[1], [0], [0], [1], [0, 0, 1, 1], [], []>} : vector<6x64xf32>, vector<64x128xf32>, vector<6x128xf32> -> vector<6x128xf32>
    %447 = arith.addf %446, %16 : vector<6x128xf32>
    %448 = arith.negf %447 : vector<6x128xf32>
    %449 = math.exp %448 : vector<6x128xf32>
    %cst_61 = arith.constant 1.000000e+00 : f32
    %450 = vector.broadcast %cst_61 : f32 to vector<6x128xf32>
    %451 = arith.addf %450, %449 : vector<6x128xf32>
    %452 = arith.divf %450, %451 : vector<6x128xf32>
    %453 = math.tanh %447 : vector<6x128xf32>
    %454 = vector.extract_strided_slice %452 {offsets = [0, 0], sizes = [6, 32], strides = [1, 1]} : vector<6x128xf32> to vector<6x32xf32>
    %455 = vector.extract_strided_slice %453 {offsets = [0, 64], sizes = [6, 32], strides = [1, 1]} : vector<6x128xf32> to vector<6x32xf32>
    %456 = arith.mulf %454, %455 : vector<6x32xf32>
    %457 = vector.extract_strided_slice %452 {offsets = [0, 32], sizes = [6, 32], strides = [1, 1]} : vector<6x128xf32> to vector<6x32xf32>
    %458 = arith.mulf %457, %423 : vector<6x32xf32>
    %459 = arith.addf %458, %456 : vector<6x32xf32>
    %460 = vector.extract_strided_slice %452 {offsets = [0, 96], sizes = [6, 32], strides = [1, 1]} : vector<6x128xf32> to vector<6x32xf32>
    %461 = math.tanh %459 : vector<6x32xf32>
    %462 = arith.mulf %460, %461 : vector<6x32xf32>
    %463 = tpu.concatenate %462, %444 in 1 : vector<6x32xf32>, vector<6x32xf32> -> vector<6x64xf32>
    %cst_62 = arith.constant dense<0.000000e+00> : vector<6x128xf32>
    %464 = tpu.matmul %463, %5, %cst_62 {dimension_numbers = #tpu.dot_dimension_numbers<[1], [0], [0], [1], [0, 0, 1, 1], [], []>} : vector<6x64xf32>, vector<64x128xf32>, vector<6x128xf32> -> vector<6x128xf32>
    %465 = arith.addf %464, %19 : vector<6x128xf32>
    %466 = arith.negf %465 : vector<6x128xf32>
    %467 = math.exp %466 : vector<6x128xf32>
    %cst_63 = arith.constant 1.000000e+00 : f32
    %468 = vector.broadcast %cst_63 : f32 to vector<6x128xf32>
    %469 = arith.addf %468, %467 : vector<6x128xf32>
    %470 = arith.divf %468, %469 : vector<6x128xf32>
    %471 = math.tanh %465 : vector<6x128xf32>
    %472 = vector.extract_strided_slice %470 {offsets = [0, 0], sizes = [6, 32], strides = [1, 1]} : vector<6x128xf32> to vector<6x32xf32>
    %473 = vector.extract_strided_slice %471 {offsets = [0, 64], sizes = [6, 32], strides = [1, 1]} : vector<6x128xf32> to vector<6x32xf32>
    %474 = arith.mulf %472, %473 : vector<6x32xf32>
    %475 = vector.extract_strided_slice %470 {offsets = [0, 32], sizes = [6, 32], strides = [1, 1]} : vector<6x128xf32> to vector<6x32xf32>
    %476 = arith.mulf %475, %441 : vector<6x32xf32>
    %477 = arith.addf %476, %474 : vector<6x32xf32>
    %478 = vector.extract_strided_slice %470 {offsets = [0, 96], sizes = [6, 32], strides = [1, 1]} : vector<6x128xf32> to vector<6x32xf32>
    %479 = math.tanh %477 : vector<6x32xf32>
    %480 = arith.mulf %478, %479 : vector<6x32xf32>
    %481 = tpu.concatenate %462, %480 in 1 : vector<6x32xf32>, vector<6x32xf32> -> vector<6x64xf32>
    %cst_64 = arith.constant dense<0.000000e+00> : vector<6x128xf32>
    %482 = tpu.matmul %481, %4, %cst_64 {dimension_numbers = #tpu.dot_dimension_numbers<[1], [0], [0], [1], [0, 0, 1, 1], [], []>} : vector<6x64xf32>, vector<64x128xf32>, vector<6x128xf32> -> vector<6x128xf32>
    %483 = arith.addf %482, %16 : vector<6x128xf32>
    %484 = arith.negf %483 : vector<6x128xf32>
    %485 = math.exp %484 : vector<6x128xf32>
    %cst_65 = arith.constant 1.000000e+00 : f32
    %486 = vector.broadcast %cst_65 : f32 to vector<6x128xf32>
    %487 = arith.addf %486, %485 : vector<6x128xf32>
    %488 = arith.divf %486, %487 : vector<6x128xf32>
    %489 = math.tanh %483 : vector<6x128xf32>
    %490 = vector.extract_strided_slice %488 {offsets = [0, 0], sizes = [6, 32], strides = [1, 1]} : vector<6x128xf32> to vector<6x32xf32>
    %491 = vector.extract_strided_slice %489 {offsets = [0, 64], sizes = [6, 32], strides = [1, 1]} : vector<6x128xf32> to vector<6x32xf32>
    %492 = arith.mulf %490, %491 : vector<6x32xf32>
    %493 = vector.extract_strided_slice %488 {offsets = [0, 32], sizes = [6, 32], strides = [1, 1]} : vector<6x128xf32> to vector<6x32xf32>
    %494 = arith.mulf %493, %459 : vector<6x32xf32>
    %495 = arith.addf %494, %492 : vector<6x32xf32>
    %496 = vector.extract_strided_slice %488 {offsets = [0, 96], sizes = [6, 32], strides = [1, 1]} : vector<6x128xf32> to vector<6x32xf32>
    %497 = math.tanh %495 : vector<6x32xf32>
    %498 = arith.mulf %496, %497 : vector<6x32xf32>
    %499 = tpu.concatenate %498, %480 in 1 : vector<6x32xf32>, vector<6x32xf32> -> vector<6x64xf32>
    %cst_66 = arith.constant dense<0.000000e+00> : vector<6x128xf32>
    %500 = tpu.matmul %499, %5, %cst_66 {dimension_numbers = #tpu.dot_dimension_numbers<[1], [0], [0], [1], [0, 0, 1, 1], [], []>} : vector<6x64xf32>, vector<64x128xf32>, vector<6x128xf32> -> vector<6x128xf32>
    %501 = arith.addf %500, %19 : vector<6x128xf32>
    %502 = arith.negf %501 : vector<6x128xf32>
    %503 = math.exp %502 : vector<6x128xf32>
    %cst_67 = arith.constant 1.000000e+00 : f32
    %504 = vector.broadcast %cst_67 : f32 to vector<6x128xf32>
    %505 = arith.addf %504, %503 : vector<6x128xf32>
    %506 = arith.divf %504, %505 : vector<6x128xf32>
    %507 = math.tanh %501 : vector<6x128xf32>
    %508 = vector.extract_strided_slice %506 {offsets = [0, 0], sizes = [6, 32], strides = [1, 1]} : vector<6x128xf32> to vector<6x32xf32>
    %509 = vector.extract_strided_slice %507 {offsets = [0, 64], sizes = [6, 32], strides = [1, 1]} : vector<6x128xf32> to vector<6x32xf32>
    %510 = arith.mulf %508, %509 : vector<6x32xf32>
    %511 = vector.extract_strided_slice %506 {offsets = [0, 32], sizes = [6, 32], strides = [1, 1]} : vector<6x128xf32> to vector<6x32xf32>
    %512 = arith.mulf %511, %477 : vector<6x32xf32>
    %513 = arith.addf %512, %510 : vector<6x32xf32>
    %514 = vector.extract_strided_slice %506 {offsets = [0, 96], sizes = [6, 32], strides = [1, 1]} : vector<6x128xf32> to vector<6x32xf32>
    %515 = math.tanh %513 : vector<6x32xf32>
    %516 = arith.mulf %514, %515 : vector<6x32xf32>
    %517 = tpu.concatenate %372, %408, %444, %480, %516 in 0 : vector<6x32xf32>, vector<6x32xf32>, vector<6x32xf32>, vector<6x32xf32>, vector<6x32xf32> -> vector<30x32xf32>
    %cst_68 = arith.constant dense<0.000000e+00> : vector<30x128xf32>
    %518 = tpu.matmul %517, %6, %cst_68 {dimension_numbers = #tpu.dot_dimension_numbers<[1], [0], [0], [1], [0, 0, 1, 1], [], []>} : vector<30x32xf32>, vector<32x128xf32>, vector<30x128xf32> -> vector<30x128xf32>
    %519 = arith.addf %518, %25 : vector<30x128xf32>
    %520 = vector.extract_strided_slice %519 {offsets = [0, 0], sizes = [30, 1], strides = [1, 1]} : vector<30x128xf32> to vector<30x1xf32>
    %c0_69 = arith.constant 0 : index
    %c0_70 = arith.constant 0 : index
    %521 = vector.load %arg2[%c0_69, %c0_70] : memref<30x1xf32, #tpu.memory_space<vmem>>, vector<30x1xf32>
    tpu.vector_store %arg2[%c0_69, %c0_70], %520 {strides = array<i32>} : memref<30x1xf32, #tpu.memory_space<vmem>>, vector<30x1xf32>,
    return
  }
}

</mosaic_0001>

<bundles_post_ra>
// kernel: _lambda_.1
= control target key start
LH: loop header
LB: loop body
LE: loop exit
PB: predicated region body
PF: predicated region fallthrough
CT: control target
= control target key end

     0   :  { %7 = vsyncpa [#allocation3], 0  ;;  %s2164_s12 = smov [#allocation2]   ;;  %s2165_s14 = smov 128   ;;  %s2678_s0 = inlined_call_operand.vmem [shape: f32[6,8], index: 0, kind: input, shape index: {}]   ;;  %s2679_s1 = inlined_call_operand.hbm [shape: f32[264,128], index: 1, kind: input, shape index: {}]   ;;  %s2680_s2 = inlined_call_operand.vmem [shape: f32[30,1], index: 2, kind: output, shape index: {}]  }
   0x1   :  { %s14_s11 = sshll.u32 %s2679_s1, 4  ;;  %s16_s13 = sshll.u32 %s2164_s12, 4  ;;  %s15_s11 = int_to_ptr.hbm [resolvable:$true] %s14_s11  ;;  %s17_s13 = int_to_ptr.vmem [resolvable:$true] %s16_s13 }
   0x2   :  { %s2166_s15 = smov 8  }
   0x3   :  { %22 = dma.hbm_to_vmem [thread:$0]  %s15_s11, 4224, %s17_s13, [#allocation3], %s2165_s14, %s2165_s14, %s2166_s15  }
   0x4   :  { %2162 = dma.done.wait [#allocation3], 4224  }
   0x5   :  { %2163 = vsyncadd [#allocation3], 4294963072  ;;  %v2167_v0 = vmov 0   ;;  %v2199_v1 = vld [vmem:[%s2678_s0] sm:$0x3f]  ;;  %s2168_s1 = smov 64  }
   0x6   :  { %1910 = vset.pattern.permute.xlu0 %v2167_v0  ;;  %v2202_v2 = vld [vmem:[#allocation2 + $0x100] ss:$0 sm:$0xff]  ;;  %v2204_v3 = vld [vmem:[#allocation2 + $0x101] ss:$0 sm:$0xff]  ;;  %s2169_s18 = smov 32   ;;  %s2170_s19 = smov 96  }
   0x7   :  { %75 = vperm.xlu0 %1910, %v2199_v1   ;;  %v2211_v24 = vld [vmem:[#allocation2 + $0x38] sm:$0xff]  ;;  %v2215_v26 = vld [vmem:[#allocation2 + $0x30] sm:$0xff]  ;;  %v2221_v28 = vld [vmem:[#allocation2 + $0x28] sm:$0xff]  ;;  %v2171_v34 = vmov 1   ;;  %vm157_vm4 = vcmask 261120   ;;  %vm282_vm13 = vcmask 523264  }
   0x8   :  { %v2213_v25 = vld [vmem:[#allocation2 + $0x18] sm:$0xff]  ;;  %172 = vmatpush.msra.mxu3 %v2211_v24  ;;  %v2219_v27 = vld [vmem:[#allocation2 + $0x10] sm:$0xff]  ;;  %v2223_v29 = vld [vmem:[#allocation2 + $0x8] sm:$0xff]  ;;  %1911 = vset.pattern.permute.xlu2 %v2171_v34 }
   0x9   :  { %223 = vmatpush.msra.mxu1 %v2213_v25  ;;  %748 = vmatpush.msra.mxu0 %v2213_v25  ;;  %v2233_v32 = vld [vmem:[#allocation2 + $0x20] sm:$0xff]  ;;  %v2264_v34 = vld [vmem:[#allocation2 + $0x58] sm:$0xff] }
   0xa   :  { %173 = vmatpush.msra.mxu3 %v2215_v26  ;;  %v2235_v33 = vld [vmem:[#allocation2] sm:$0xff]  ;;  %82 = vperm.xlu2 %1911, %v2199_v1  }
   0xb   :  { %224 = vmatpush.msra.mxu1 %v2219_v27  ;;  %749 = vmatpush.msra.mxu0 %v2219_v27  ;;  %v2249_v41 = vld [vmem:[#allocation2 + $0x102] ss:$0 sm:$0xff] }
   0xc   :  { %174 = vmatpush.msra.mxu3 %v2221_v28  ;;  %294 = vmatpush.msra.mxu2 %v2264_v34 }
   0xd   :  { %225 = vmatpush.msra.mxu1 %v2223_v29  ;;  %750 = vmatpush.msra.mxu0 %v2223_v29 }
   0xe   :  { %175 = vmatpush.msra.mxu3 %v2233_v32 }
   0xf   :  { %226 = vmatpush.msra.mxu1 %v2235_v33  ;;  %751 = vmatpush.msra.mxu0 %v2235_v33 }
  0x10   :  { %361 = vmatpush.msrb.mxu3 %v2213_v25 }
  0x11   :  { %427 = vmatpush.msrb.mxu1 %v2264_v34  ;;  %943 = vmatpush.msrb.mxu0 %v2264_v34 }
  0x12   :  { %362 = vmatpush.msrb.mxu3 %v2219_v27 }
  0x14   :  { %363 = vmatpush.msrb.mxu3 %v2223_v29 }
  0x16   :  { %364 = vmatpush.msrb.mxu3 %v2235_v33 }
  0x64   :  { %v83_v36 = vpop.permute.xlu2 %82 }
  0x65   :  { %v85_v37 = vmul.f32 %v2202_v2, %v83_v36  ;;  %v2270_v36 = vld [vmem:[#allocation2 + $0x48] sm:$0xff] }
  0x67   :  { %v86_v38 = vadd.f32 %v2204_v3, %v85_v37  ;;  %v2276_v37 = vld [vmem:[#allocation2 + $0x40] sm:$0xff] }
  0x79   :  { %v76_v4 = vpop.permute.xlu0 %75 }
  0x7a   :  { %v79_v5 = vmul.f32 %v2202_v2, %v76_v4 }
  0x7c   :  { %v80_v6 = vadd.f32 %v2204_v3, %v79_v5 }
  0x7e   :  { %1926 = vtanh.f32 %v80_v6  ;;  %v1841_v8 = vmul.f32 -1.442695, %v80_v6 }
  0x80   :  { %1928 = vpow2.f32 %v1841_v8 }
  0x84   :  { %v1927_v7 = vpop.eup %1926 }
  0x85   :  { %144 = vrot.lane.b32.xlu0 %v1927_v7, %s2168_s1 }
  0x86   :  { %v1929_v9 = vpop.eup %1928 }
  0x87   :  { %v126_v10 = vadd.f32 1.0, %v1929_v9 }
  0x89   :  { %1930 = vrcp.f32 %v126_v10  ;;  %v138_v16 = vand.u32 2147483648, %v126_v10  ;;  %vm132_vm1 = vweird.f32 %v126_v10  ;;  %v136_v17 = vand.u32 2147483647, %v126_v10 }
  0x8b   :  { %v139_v19 = vor.u32 1.1754944e-38, %v138_v16  ;;  %vm137_vm3 = vcmp.eq.f32.partialorder %v136_v17, 8.507059e+37  ;;  %v2172_v16 = vmov 2  }
  0x8c   :  { %1912 = vset.pattern.permute.xlu1 %v2172_v16 }
  0x8f   :  { %v1931_v11 = vpop.eup %1930 }
  0x90   :  { %v128_v12 = vmul.f32 %v1931_v11, %v126_v10  ;;  %vm133_vm0 = vweird.f32 %v1931_v11 }
  0x91   :  { %vm134_vm2 = vmor %vm132_vm1, %vm133_vm0 }
  0x92   :  { %v129_v13 = vsub.f32 1.0, %v128_v12 }
  0x94   :  { %v130_v14 = vmul.f32 %v1931_v11, %v129_v13 }
  0x96   :  { %v131_v15 = vadd.f32 %v1931_v11, %v130_v14 }
  0x98   :  { %v135_v18 = vsel %vm134_vm2, %v1931_v11, %v131_v15 }
  0x99   :  { %v140_v21 = vsel %vm137_vm3, %v139_v19, %v135_v18 }
  0xf7   :  { %v145_v20 = vpop.permute.xlu0 %144 }
  0xf8   :  { %v147_v22 = vmul.f32 %v145_v20, %v140_v21 }
  0xfa   :  { %1932 = vtanh.f32 %v147_v22  ;;  %258 = vrot.lane.b32.xlu0 %v147_v22, %s2169_s18 }
 0x100   :  { %v1933_v23 = vpop.eup %1932 }
 0x101   :  { %150 = vrot.lane.b32.xlu1 %v1933_v23, %s2170_s19 }
 0x16c   :  { %v259_v17 = vpop.permute.xlu0 %258 }
 0x173   :  { %v151_v30 = vpop.permute.xlu1 %150 }
 0x174   :  { %v153_v31 = vmul.f32 %v151_v30, %v140_v21 }
 0x176   :  { %155 = vrot.lane.b32.xlu1 %v153_v31, %s2169_s18 }
 0x1e8   :  { %v156_v35 = vpop.permute.xlu1 %155 }
 0x1e9   :  { %1842 = vmatmul.msk.f32.vlgmr.msra.gmra.mxu3 %vm157_vm4, %v156_v35  ;;  %1844 = vmatmul.msk.f32.vlgmr.msra.gmra.mxu1 %vm157_vm4, %v156_v35  ;;  %v2266_v35 = vld [vmem:[#allocation2 + $0x50] sm:$0xff] }
 0x1ea   :  { %556 = vmatpush.msra.mxu3 %v2264_v34  ;;  %295 = vmatpush.msra.mxu2 %v2266_v35 }
 0x1eb   :  { %428 = vmatpush.msrb.mxu1 %v2266_v35  ;;  %944 = vmatpush.msrb.mxu0 %v2266_v35 }
 0x1ec   :  { %557 = vmatpush.msra.mxu3 %v2266_v35  ;;  %296 = vmatpush.msra.mxu2 %v2270_v36 }
 0x1ed   :  { %429 = vmatpush.msrb.mxu1 %v2270_v36  ;;  %945 = vmatpush.msrb.mxu0 %v2270_v36 }
 0x1ee   :  { %558 = vmatpush.msra.mxu3 %v2270_v36  ;;  %297 = vmatpush.msra.mxu2 %v2276_v37 }
 0x1ef   :  { %430 = vmatpush.msrb.mxu1 %v2276_v37  ;;  %946 = vmatpush.msrb.mxu0 %v2276_v37 }
 0x1f0   :  { %559 = vmatpush.msra.mxu3 %v2276_v37  ;;  %298 = vmatpush.msra.mxu2 %v2211_v24 }
 0x1f1   :  { %431 = vmatpush.msrb.mxu1 %v2211_v24  ;;  %947 = vmatpush.msrb.mxu0 %v2211_v24 }
 0x1f2   :  { %560 = vmatpush.msra.mxu3 %v2211_v24  ;;  %299 = vmatpush.msra.mxu2 %v2215_v26 }
 0x1f3   :  { %432 = vmatpush.msrb.mxu1 %v2215_v26  ;;  %948 = vmatpush.msrb.mxu0 %v2215_v26 }
 0x1f4   :  { %561 = vmatpush.msra.mxu3 %v2215_v26  ;;  %300 = vmatpush.msra.mxu2 %v2221_v28 }
 0x1f5   :  { %433 = vmatpush.msrb.mxu1 %v2221_v28  ;;  %949 = vmatpush.msrb.mxu0 %v2221_v28 }
 0x1f6   :  { %562 = vmatpush.msra.mxu3 %v2221_v28  ;;  %301 = vmatpush.msra.mxu2 %v2233_v32 }
 0x1f7   :  { %434 = vmatpush.msrb.mxu1 %v2233_v32  ;;  %950 = vmatpush.msrb.mxu0 %v2233_v32 }
 0x1f8   :  { %563 = vmatpush.msra.mxu3 %v2233_v32  ;;  %685 = vmatpush.msrb.mxu2 %v2264_v34 }
 0x1f9   :  { %490 = vmatpush.msra.mxu1 %v2213_v25 }
 0x1fa   :  { %686 = vmatpush.msrb.mxu2 %v2266_v35 }
 0x1fb   :  { %491 = vmatpush.msra.mxu1 %v2219_v27 }
 0x1fc   :  { %687 = vmatpush.msrb.mxu2 %v2270_v36 }
 0x1fd   :  { %492 = vmatpush.msra.mxu1 %v2223_v29 }
 0x1fe   :  { %688 = vmatpush.msrb.mxu2 %v2276_v37 }
 0x1ff   :  { %493 = vmatpush.msra.mxu1 %v2235_v33 }
 0x200   :  { %689 = vmatpush.msrb.mxu2 %v2211_v24 }
 0x202   :  { %690 = vmatpush.msrb.mxu2 %v2215_v26 }
 0x204   :  { %691 = vmatpush.msrb.mxu2 %v2221_v28 }
 0x206   :  { %692 = vmatpush.msrb.mxu2 %v2233_v32 }
 0x266   :  { %v228_v39 = vpop.f32.mrf.mxu1 }
 0x267   :  { %v231_v40 = vadd.f32 %v228_v39, %v86_v38 }
 0x269   :  { %1934 = vtanh.f32 %v231_v40  ;;  %v1845_v46 = vmul.f32 -1.442695, %v231_v40 }
 0x26c   :  { %v177_v42 = vpop.f32.mrf.mxu3 }
 0x26d   :  { %v178_v43 = vadd.f32 %v2249_v41, %v177_v42 }
 0x26f   :  { %v1935_v44 = vpop.eup %1934  ;;  %1936 = vtanh.f32 %v178_v43  ;;  %v1843_v51 = vmul.f32 -1.442695, %v178_v43 }
 0x270   :  { %253 = vrot.lane.b32.xlu2 %v1935_v44, %s2168_s1  ;;  %1938 = vpow2.f32 %v1845_v46 }
 0x275   :  { %v1937_v45 = vpop.eup %1936 }
 0x276   :  { %201 = vrot.lane.b32.xlu1 %v1937_v45, %s2168_s1  ;;  %v1939_v47 = vpop.eup %1938 }
 0x277   :  { %v235_v48 = vadd.f32 1.0, %v1939_v47 }
 0x279   :  { %1940 = vrcp.f32 %v235_v48  ;;  %v247_v55 = vand.u32 2147483648, %v235_v48  ;;  %vm241_vm6 = vweird.f32 %v235_v48  ;;  %v245_v57 = vand.u32 2147483647, %v235_v48 }
 0x27a   :  { %1942 = vpow2.f32 %v1843_v51 }
 0x27b   :  { %v248_v60 = vor.u32 1.1754944e-38, %v247_v55  ;;  %vm246_vm8 = vcmp.eq.f32.partialorder %v245_v57, 8.507059e+37 }
 0x27f   :  { %v1941_v49 = vpop.eup %1940 }
 0x280   :  { %v237_v50 = vmul.f32 %v1941_v49, %v235_v48  ;;  %vm242_vm5 = vweird.f32 %v1941_v49  ;;  %v1943_v56 = vpop.eup %1942 }
 0x281   :  { %vm243_vm7 = vmor %vm241_vm6, %vm242_vm5  ;;  %v183_v59 = vadd.f32 1.0, %v1943_v56 }
 0x282   :  { %v238_v52 = vsub.f32 1.0, %v237_v50 }
 0x283   :  { %1944 = vrcp.f32 %v183_v59  ;;  %v195_v8 = vand.u32 2147483648, %v183_v59  ;;  %vm189_vm10 = vweird.f32 %v183_v59  ;;  %v193_v9 = vand.u32 2147483647, %v183_v59 }
 0x284   :  { %v239_v53 = vmul.f32 %v1941_v49, %v238_v52 }
 0x285   :  { %v196_v11 = vor.u32 1.1754944e-38, %v195_v8  ;;  %vm194_vm12 = vcmp.eq.f32.partialorder %v193_v9, 8.507059e+37 }
 0x286   :  { %v240_v54 = vadd.f32 %v1941_v49, %v239_v53 }
 0x288   :  { %v244_v58 = vsel %vm243_vm7, %v1941_v49, %v240_v54 }
 0x289   :  { %v249_v62 = vsel %vm246_vm8, %v248_v60, %v244_v58  ;;  %v1945_v0 = vpop.eup %1944 }
 0x28a   :  { %v185_v4 = vmul.f32 %v1945_v0, %v183_v59  ;;  %vm190_vm9 = vweird.f32 %v1945_v0  ;;  %v261_v18 = vmul.f32 %v259_v17, %v249_v62 }
 0x28b   :  { %vm191_vm11 = vmor %vm189_vm10, %vm190_vm9 }
 0x28c   :  { %v186_v5 = vsub.f32 1.0, %v185_v4 }
 0x28e   :  { %v187_v6 = vmul.f32 %v1945_v0, %v186_v5 }
 0x290   :  { %v188_v7 = vadd.f32 %v1945_v0, %v187_v6 }
 0x292   :  { %v192_v10 = vsel %vm191_vm11, %v1945_v0, %v188_v7 }
 0x293   :  { %v197_v13 = vsel %vm194_vm12, %v196_v11, %v192_v10 }
 0x2ca   :  { %v254_v61 = vpop.permute.xlu2 %253 }
 0x2cb   :  { %v256_v63 = vmul.f32 %v254_v61, %v249_v62 }
 0x2cd   :  { %263 = vrot.lane.b32.xlu2 %v256_v63, %s2169_s18 }
 0x2e8   :  { %v202_v12 = vpop.permute.xlu1 %201 }
 0x2e9   :  { %v204_v14 = vmul.f32 %v202_v12, %v197_v13 }
 0x2eb   :  { %1946 = vtanh.f32 %v204_v14 }
 0x2f1   :  { %v1947_v15 = vpop.eup %1946 }
 0x2f2   :  { %207 = vrot.lane.b32.xlu0 %v1947_v15, %s2170_s19 }
 0x327   :  { %v264_v19 = vpop.permute.xlu2 %263 }
 0x328   :  { %v2256_v20 = vadd.f32 %v264_v19, %v261_v18 }
 0x32a   :  { %1948 = vtanh.f32 %v2256_v20 }
 0x330   :  { %v1949_v21 = vpop.eup %1948 }
 0x331   :  { %269 = vrot.lane.b32.xlu1 %v1949_v21, %s2168_s1 }
 0x339   :  { %88 = vperm.xlu1 %1912, %v2199_v1  }
 0x341   :  { %332 = vrot.lane.b32.xlu1 %v204_v14, %s2169_s18 }
 0x364   :  { %v208_v22 = vpop.permute.xlu0 %207 }
 0x365   :  { %v210_v23 = vmul.f32 %v208_v22, %v197_v13 }
 0x367   :  { %278 = vrot.lane.b32.xlu0 %v210_v23, %s2168_s1 }
 0x3a3   :  { %v270_v30 = vpop.permute.xlu1 %269 }
 0x3a4   :  { %v272_v31 = vmul.f32 %v270_v30, %v249_v62 }
 0x3a6   :  { %274 = vrot.lane.b32.xlu2 %v272_v31, %s2169_s18 }
 0x3ab   :  { %v89_v42 = vpop.permute.xlu1 %88 }
 0x3ac   :  { %v91_v43 = vmul.f32 %v2202_v2, %v89_v42 }
 0x3ae   :  { %v92_v44 = vadd.f32 %v2204_v3, %v91_v43 }
 0x3b3   :  { %v333_v21 = vpop.permute.xlu1 %332 }
 0x3d9   :  { %v279_v38 = vpop.permute.xlu0 %278 }
 0x400   :  { %v275_v39 = vpop.permute.xlu2 %274 }
 0x401   :  { %1848 = vmatmul.msk.f32.vlgmr.msrb.gmra.mxu3 %vm157_vm4, %v275_v39  ;;  %v281_v40 = vsel %vm157_vm4, %v275_v39, %v279_v38 }
 0x402   :  { %1846 = vmatmul.msk.f32.vlgmr.msra.gmra.mxu2 %vm282_vm13, %v281_v40  ;;  %877 = vmatpush.msrb.mxu3 %v2213_v25 }
 0x403   :  { %1006 = vmatpush.msra.mxu2 %v2213_v25 }
 0x404   :  { %878 = vmatpush.msrb.mxu3 %v2219_v27 }
 0x405   :  { %1007 = vmatpush.msra.mxu2 %v2219_v27 }
 0x406   :  { %879 = vmatpush.msrb.mxu3 %v2223_v29 }
 0x407   :  { %1008 = vmatpush.msra.mxu2 %v2223_v29 }
 0x408   :  { %880 = vmatpush.msrb.mxu3 %v2235_v33 }
 0x409   :  { %1009 = vmatpush.msra.mxu2 %v2235_v33 }
 0x484   :  { %v366_v45 = vpop.f32.mrf.mxu3 }
 0x485   :  { %v369_v46 = vadd.f32 %v366_v45, %v92_v44  ;;  %v303_v47 = vpop.f32.mrf.mxu2 }
 0x486   :  { %v304_v48 = vadd.f32 %v2249_v41, %v303_v47  ;;  %v2173_v47 = vmov 3  }
 0x487   :  { %1950 = vtanh.f32 %v369_v46  ;;  %v1849_v55 = vmul.f32 -1.442695, %v369_v46  ;;  %1913 = vset.pattern.permute.xlu2 %v2173_v47 }
 0x488   :  { %1952 = vtanh.f32 %v304_v48  ;;  %v1847_v51 = vmul.f32 -1.442695, %v304_v48 }
 0x48a   :  { %1954 = vpow2.f32 %v1847_v51 }
 0x48d   :  { %v1951_v49 = vpop.eup %1950 }
 0x48e   :  { %v1953_v50 = vpop.eup %1952  ;;  %391 = vrot.lane.b32.xlu0 %v1951_v49, %s2168_s1 }
 0x48f   :  { %327 = vrot.lane.b32.xlu2 %v1953_v50, %s2168_s1 }
 0x490   :  { %v1955_v52 = vpop.eup %1954 }
 0x491   :  { %v309_v53 = vadd.f32 1.0, %v1955_v52 }
 0x493   :  { %1956 = vrcp.f32 %v309_v53  ;;  %v321_v62 = vand.u32 2147483648, %v309_v53  ;;  %vm315_vm15 = vweird.f32 %v309_v53  ;;  %v319_v63 = vand.u32 2147483647, %v309_v53 }
 0x494   :  { %1958 = vpow2.f32 %v1849_v55 }
 0x495   :  { %v322_v4 = vor.u32 1.1754944e-38, %v321_v62  ;;  %vm320_vm1 = vcmp.eq.f32.partialorder %v319_v63, 8.507059e+37 }
 0x499   :  { %v1957_v54 = vpop.eup %1956 }
 0x49a   :  { %v311_v56 = vmul.f32 %v1957_v54, %v309_v53  ;;  %v1959_v58 = vpop.eup %1958  ;;  %vm316_vm14 = vweird.f32 %v1957_v54 }
 0x49b   :  { %v373_v60 = vadd.f32 1.0, %v1959_v58  ;;  %vm317_vm0 = vmor %vm315_vm15, %vm316_vm14 }
 0x49c   :  { %v312_v57 = vsub.f32 1.0, %v311_v56 }
 0x49d   :  { %1960 = vrcp.f32 %v373_v60  ;;  %v385_v13 = vand.u32 2147483648, %v373_v60  ;;  %vm379_vm3 = vweird.f32 %v373_v60  ;;  %v383_v14 = vand.u32 2147483647, %v373_v60 }
 0x49e   :  { %v313_v59 = vmul.f32 %v1957_v54, %v312_v57 }
 0x49f   :  { %v386_v16 = vor.u32 1.1754944e-38, %v385_v13  ;;  %vm384_vm6 = vcmp.eq.f32.partialorder %v383_v14, 8.507059e+37 }
 0x4a0   :  { %v314_v61 = vadd.f32 %v1957_v54, %v313_v59 }
 0x4a2   :  { %v318_v0 = vsel %vm317_vm0, %v1957_v54, %v314_v61 }
 0x4a3   :  { %v323_v6 = vsel %vm320_vm1, %v322_v4, %v318_v0  ;;  %v1961_v7 = vpop.eup %1960 }
 0x4a4   :  { %v375_v9 = vmul.f32 %v1961_v7, %v373_v60  ;;  %vm380_vm2 = vweird.f32 %v1961_v7  ;;  %v335_v22 = vmul.f32 %v333_v21, %v323_v6 }
 0x4a5   :  { %vm381_vm5 = vmor %vm379_vm3, %vm380_vm2 }
 0x4a6   :  { %v376_v10 = vsub.f32 1.0, %v375_v9 }
 0x4a8   :  { %v377_v11 = vmul.f32 %v1961_v7, %v376_v10 }
 0x4aa   :  { %v378_v12 = vadd.f32 %v1961_v7, %v377_v11 }
 0x4ac   :  { %v382_v15 = vsel %vm381_vm5, %v1961_v7, %v378_v12 }
 0x4ad   :  { %v387_v18 = vsel %vm384_vm6, %v386_v16, %v382_v15 }
 0x4ae   :  { %v395_v38 = vmul.f32 %v387_v18, %v2256_v20 }
 0x4e9   :  { %v328_v5 = vpop.permute.xlu2 %327 }
 0x4ea   :  { %v330_v8 = vmul.f32 %v328_v5, %v323_v6 }
 0x4ec   :  { %337 = vrot.lane.b32.xlu2 %v330_v8, %s2169_s18 }
 0x500   :  { %v392_v17 = vpop.permute.xlu0 %391 }
 0x501   :  { %v394_v19 = vmul.f32 %v392_v17, %v387_v18 }
 0x503   :  { %397 = vrot.lane.b32.xlu0 %v394_v19, %s2169_s18 }
 0x546   :  { %v338_v23 = vpop.permute.xlu2 %337 }
 0x547   :  { %v2334_v30 = vadd.f32 %v338_v23, %v335_v22 }
 0x549   :  { %1962 = vtanh.f32 %v2334_v30 }
 0x54f   :  { %v1963_v31 = vpop.eup %1962 }
 0x550   :  { %343 = vrot.lane.b32.xlu1 %v1963_v31, %s2168_s1 }
 0x575   :  { %v398_v39 = vpop.permute.xlu0 %397 }
 0x576   :  { %v2339_v40 = vadd.f32 %v398_v39, %v395_v38 }
 0x578   :  { %1964 = vtanh.f32 %v2339_v40 }
 0x57e   :  { %v1965_v42 = vpop.eup %1964 }
 0x57f   :  { %403 = vrot.lane.b32.xlu2 %v1965_v42, %s2168_s1 }
 0x587   :  { %94 = vperm.xlu2 %1913, %v2199_v1  }
 0x5c2   :  { %v344_v43 = vpop.permute.xlu1 %343 }
 0x5c3   :  { %v346_v44 = vmul.f32 %v344_v43, %v323_v6 }
 0x5c5   :  { %412 = vrot.lane.b32.xlu1 %v346_v44, %s2168_s1 }
 0x5d9   :  { %v404_v45 = vpop.permute.xlu2 %403 }
 0x5da   :  { %v406_v46 = vmul.f32 %v404_v45, %v387_v18 }
 0x5dc   :  { %408 = vrot.lane.b32.xlu0 %v406_v46, %s2169_s18 }
 0x637   :  { %v413_v20 = vpop.permute.xlu1 %412 }
 0x64e   :  { %v409_v48 = vpop.permute.xlu0 %408 }
 0x64f   :  { %v415_v49 = vsel %vm157_vm4, %v409_v48, %v413_v20 }
 0x650   :  { %1850 = vmatmul.msk.f32.vlgmr.msrb.gmra.mxu1 %vm282_vm13, %v415_v49 }
 0x651   :  { %619 = vmatpush.msrb.mxu1 %v2213_v25  ;;  %v95_v25 = vpop.permute.xlu2 %94 }
 0x653   :  { %620 = vmatpush.msrb.mxu1 %v2219_v27 }
 0x655   :  { %621 = vmatpush.msrb.mxu1 %v2223_v29 }
 0x657   :  { %622 = vmatpush.msrb.mxu1 %v2235_v33  ;;  %v97_v33 = vmul.f32 %v2202_v2, %v95_v25  ;;  %v2174_v25 = vmov 4  }
 0x658   :  { %1852 = vmatmul.msk.f32.vlgmr.msra.gmra.mxu1 %vm157_vm4, %v409_v48  ;;  %1914 = vset.pattern.permute.xlu2 %v2174_v25 }
 0x659   :  { %814 = vmatpush.msra.mxu1 %v2264_v34  ;;  %v98_v50 = vadd.f32 %v2204_v3, %v97_v33 }
 0x65b   :  { %815 = vmatpush.msra.mxu1 %v2266_v35 }
 0x65d   :  { %816 = vmatpush.msra.mxu1 %v2270_v36 }
 0x65f   :  { %817 = vmatpush.msra.mxu1 %v2276_v37 }
 0x661   :  { %818 = vmatpush.msra.mxu1 %v2211_v24 }
 0x663   :  { %819 = vmatpush.msra.mxu1 %v2215_v26 }
 0x665   :  { %820 = vmatpush.msra.mxu1 %v2221_v28 }
 0x667   :  { %821 = vmatpush.msra.mxu1 %v2233_v32 }
 0x6cd   :  { %v436_v27 = vpop.f32.mrf.mxu1 }
 0x6ce   :  { %v437_v29 = vadd.f32 %v2249_v41, %v436_v27 }
 0x6d0   :  { %1966 = vtanh.f32 %v437_v29  ;;  %v1851_v55 = vmul.f32 -1.442695, %v437_v29 }
 0x6d5   :  { %v495_v51 = vpop.f32.mrf.mxu1 }
 0x6d6   :  { %v1967_v52 = vpop.eup %1966  ;;  %v498_v53 = vadd.f32 %v495_v51, %v98_v50 }
 0x6d7   :  { %460 = vrot.lane.b32.xlu0 %v1967_v52, %s2168_s1 }
 0x6d8   :  { %1968 = vtanh.f32 %v498_v53  ;;  %v1853_v56 = vmul.f32 -1.442695, %v498_v53 }
 0x6d9   :  { %1970 = vpow2.f32 %v1851_v55 }
 0x6da   :  { %1972 = vpow2.f32 %v1853_v56 }
 0x6de   :  { %v1969_v54 = vpop.eup %1968 }
 0x6df   :  { %520 = vrot.lane.b32.xlu1 %v1969_v54, %s2168_s1  ;;  %v1971_v57 = vpop.eup %1970 }
 0x6e0   :  { %v442_v58 = vadd.f32 1.0, %v1971_v57  ;;  %v1973_v59 = vpop.eup %1972 }
 0x6e1   :  { %v502_v60 = vadd.f32 1.0, %v1973_v59 }
 0x6e2   :  { %1974 = vrcp.f32 %v442_v58  ;;  %v454_v8 = vand.u32 2147483648, %v442_v58  ;;  %vm448_vm8 = vweird.f32 %v442_v58  ;;  %v452_v9 = vand.u32 2147483647, %v442_v58 }
 0x6e3   :  { %1976 = vrcp.f32 %v502_v60  ;;  %v514_v17 = vand.u32 2147483648, %v502_v60  ;;  %vm508_vm12 = vweird.f32 %v502_v60  ;;  %v512_v18 = vand.u32 2147483647, %v502_v60 }
 0x6e4   :  { %v455_v12 = vor.u32 1.1754944e-38, %v454_v8  ;;  %vm453_vm10 = vcmp.eq.f32.partialorder %v452_v9, 8.507059e+37 }
 0x6e5   :  { %v515_v21 = vor.u32 1.1754944e-38, %v514_v17  ;;  %vm513_vm15 = vcmp.eq.f32.partialorder %v512_v18, 8.507059e+37 }
 0x6e8   :  { %v1975_v61 = vpop.eup %1974 }
 0x6e9   :  { %v444_v62 = vmul.f32 %v1975_v61, %v442_v58  ;;  %v1977_v0 = vpop.eup %1976  ;;  %vm449_vm7 = vweird.f32 %v1975_v61 }
 0x6ea   :  { %v504_v5 = vmul.f32 %v1977_v0, %v502_v60  ;;  %vm450_vm9 = vmor %vm448_vm8, %vm449_vm7  ;;  %vm509_vm11 = vweird.f32 %v1977_v0 }
 0x6eb   :  { %v445_v63 = vsub.f32 1.0, %v444_v62  ;;  %vm510_vm14 = vmor %vm508_vm12, %vm509_vm11 }
 0x6ec   :  { %v505_v7 = vsub.f32 1.0, %v504_v5 }
 0x6ed   :  { %v446_v4 = vmul.f32 %v1975_v61, %v445_v63 }
 0x6ee   :  { %v506_v11 = vmul.f32 %v1977_v0, %v505_v7 }
 0x6ef   :  { %v447_v6 = vadd.f32 %v1975_v61, %v446_v4 }
 0x6f0   :  { %v507_v16 = vadd.f32 %v1977_v0, %v506_v11 }
 0x6f1   :  { %v451_v10 = vsel %vm450_vm9, %v1975_v61, %v447_v6 }
 0x6f2   :  { %v456_v14 = vsel %vm453_vm10, %v455_v12, %v451_v10  ;;  %v511_v19 = vsel %vm510_vm14, %v1977_v0, %v507_v16 }
 0x6f3   :  { %v516_v23 = vsel %vm513_vm15, %v515_v21, %v511_v19  ;;  %v464_v38 = vmul.f32 %v456_v14, %v2334_v30 }
 0x6f4   :  { %v524_v44 = vmul.f32 %v516_v23, %v2339_v40 }
 0x749   :  { %v461_v13 = vpop.permute.xlu0 %460 }
 0x74a   :  { %v463_v15 = vmul.f32 %v461_v13, %v456_v14 }
 0x74c   :  { %466 = vrot.lane.b32.xlu2 %v463_v15, %s2169_s18 }
 0x751   :  { %v521_v22 = vpop.permute.xlu1 %520 }
 0x752   :  { %v523_v31 = vmul.f32 %v521_v22, %v516_v23 }
 0x754   :  { %526 = vrot.lane.b32.xlu0 %v523_v31, %s2169_s18 }
 0x7a6   :  { %v467_v39 = vpop.permute.xlu2 %466 }
 0x7a7   :  { %v2369_v42 = vadd.f32 %v467_v39, %v464_v38 }
 0x7a9   :  { %1978 = vtanh.f32 %v2369_v42 }
 0x7af   :  { %v1979_v43 = vpop.eup %1978 }
 0x7b0   :  { %472 = vrot.lane.b32.xlu1 %v1979_v43, %s2168_s1 }
 0x7c6   :  { %v527_v45 = vpop.permute.xlu0 %526 }
 0x7c7   :  { %v2374_v46 = vadd.f32 %v527_v45, %v524_v44 }
 0x7c9   :  { %1980 = vtanh.f32 %v2374_v46 }
 0x7cf   :  { %v1981_v47 = vpop.eup %1980 }
 0x7d0   :  { %532 = vrot.lane.b32.xlu2 %v1981_v47, %s2168_s1 }
 0x7d8   :  { %100 = vperm.xlu2 %1914, %v2199_v1  }
 0x822   :  { %v473_v20 = vpop.permute.xlu1 %472 }
 0x823   :  { %v475_v30 = vmul.f32 %v473_v20, %v456_v14  ;;  %v2175_v20 = vmov 5  }
 0x824   :  { %1915 = vset.pattern.permute.xlu2 %v2175_v20  ;;  %v2446_v20 = vld [vmem:[#allocation2 + $0x101] ss:$0 sm:$0xff] }
 0x825   :  { %541 = vrot.lane.b32.xlu1 %v475_v30, %s2168_s1 }
 0x82a   :  { %v533_v48 = vpop.permute.xlu2 %532 }
 0x82b   :  { %v535_v49 = vmul.f32 %v533_v48, %v516_v23 }
 0x82d   :  { %537 = vrot.lane.b32.xlu0 %v535_v49, %s2169_s18 }
 0x832   :  { %v101_v33 = vpop.permute.xlu2 %100 }
 0x833   :  { %v103_v50 = vmul.f32 %v2202_v2, %v101_v33 }
 0x835   :  { %v104_v51 = vadd.f32 %v2204_v3, %v103_v50 }
 0x897   :  { %v542_v40 = vpop.permute.xlu1 %541 }
 0x89f   :  { %v538_v27 = vpop.permute.xlu0 %537 }
 0x8a0   :  { %v544_v29 = vsel %vm157_vm4, %v538_v27, %v542_v40  ;;  %1856 = vmatmul.msk.f32.vlgmr.msrb.gmra.mxu1 %vm157_vm4, %v538_v27 }
 0x8a1   :  { %1854 = vmatmul.msk.f32.vlgmr.msra.gmra.mxu3 %vm282_vm13, %v544_v29 }
 0x8a2   :  { %1072 = vmatpush.msra.mxu3 %v2264_v34 }
 0x8a4   :  { %1073 = vmatpush.msra.mxu3 %v2266_v35 }
 0x8a6   :  { %1074 = vmatpush.msra.mxu3 %v2270_v36 }
 0x8a8   :  { %1075 = vmatpush.msra.mxu3 %v2276_v37 }
 0x8aa   :  { %1076 = vmatpush.msra.mxu3 %v2211_v24 }
 0x8ac   :  { %1077 = vmatpush.msra.mxu3 %v2215_v26 }
 0x8ae   :  { %1078 = vmatpush.msra.mxu3 %v2221_v28 }
 0x8b0   :  { %1079 = vmatpush.msra.mxu3 %v2233_v32 }
 0x91d   :  { %v624_v34 = vpop.f32.mrf.mxu1 }
 0x91e   :  { %v627_v52 = vadd.f32 %v624_v34, %v104_v51 }
 0x920   :  { %1982 = vtanh.f32 %v627_v52  ;;  %v1857_v26 = vmul.f32 -1.442695, %v627_v52 }
 0x924   :  { %v565_v35 = vpop.f32.mrf.mxu3 }
 0x925   :  { %v566_v36 = vadd.f32 %v2249_v41, %v565_v35 }
 0x926   :  { %v1983_v37 = vpop.eup %1982 }
 0x927   :  { %1984 = vtanh.f32 %v566_v36  ;;  %649 = vrot.lane.b32.xlu0 %v1983_v37, %s2168_s1  ;;  %v1855_v28 = vmul.f32 -1.442695, %v566_v36 }
 0x928   :  { %1986 = vpow2.f32 %v1857_v26 }
 0x929   :  { %1988 = vpow2.f32 %v1855_v28 }
 0x92d   :  { %v1985_v24 = vpop.eup %1984 }
 0x92e   :  { %589 = vrot.lane.b32.xlu1 %v1985_v24, %s2168_s1  ;;  %v1987_v32 = vpop.eup %1986 }
 0x92f   :  { %v631_v53 = vadd.f32 1.0, %v1987_v32  ;;  %v1989_v54 = vpop.eup %1988 }
 0x930   :  { %v571_v55 = vadd.f32 1.0, %v1989_v54 }
 0x931   :  { %1990 = vrcp.f32 %v631_v53  ;;  %v643_v0 = vand.u32 2147483648, %v631_v53  ;;  %vm637_vm1 = vweird.f32 %v631_v53  ;;  %v641_v4 = vand.u32 2147483647, %v631_v53 }
 0x932   :  { %1992 = vrcp.f32 %v571_v55  ;;  %v583_v12 = vand.u32 2147483648, %v571_v55  ;;  %vm577_vm6 = vweird.f32 %v571_v55  ;;  %v581_v13 = vand.u32 2147483647, %v571_v55 }
 0x933   :  { %v644_v7 = vor.u32 1.1754944e-38, %v643_v0  ;;  %vm642_vm3 = vcmp.eq.f32.partialorder %v641_v4, 8.507059e+37 }
 0x934   :  { %v584_v15 = vor.u32 1.1754944e-38, %v583_v12  ;;  %vm582_vm8 = vcmp.eq.f32.partialorder %v581_v13, 8.507059e+37 }
 0x937   :  { %v1991_v56 = vpop.eup %1990 }
 0x938   :  { %v633_v57 = vmul.f32 %v1991_v56, %v631_v53  ;;  %v1993_v58 = vpop.eup %1992  ;;  %vm638_vm0 = vweird.f32 %v1991_v56 }
 0x939   :  { %v573_v60 = vmul.f32 %v1993_v58, %v571_v55  ;;  %vm639_vm2 = vmor %vm637_vm1, %vm638_vm0  ;;  %vm578_vm5 = vweird.f32 %v1993_v58 }
 0x93a   :  { %v634_v59 = vsub.f32 1.0, %v633_v57  ;;  %vm579_vm7 = vmor %vm577_vm6, %vm578_vm5 }
 0x93b   :  { %v574_v62 = vsub.f32 1.0, %v573_v60 }
 0x93c   :  { %v635_v61 = vmul.f32 %v1991_v56, %v634_v59 }
 0x93d   :  { %v575_v5 = vmul.f32 %v1993_v58, %v574_v62 }
 0x93e   :  { %v636_v63 = vadd.f32 %v1991_v56, %v635_v61 }
 0x93f   :  { %v576_v10 = vadd.f32 %v1993_v58, %v575_v5 }
 0x940   :  { %v640_v6 = vsel %vm639_vm2, %v1991_v56, %v636_v63 }
 0x941   :  { %v645_v9 = vsel %vm642_vm3, %v644_v7, %v640_v6  ;;  %v580_v14 = vsel %vm579_vm7, %v1993_v58, %v576_v10 }
 0x942   :  { %v585_v17 = vsel %vm582_vm8, %v584_v15, %v580_v14  ;;  %v653_v19 = vmul.f32 %v645_v9, %v2374_v46 }
 0x943   :  { %v593_v31 = vmul.f32 %v585_v17, %v2369_v42 }
 0x999   :  { %v650_v8 = vpop.permute.xlu0 %649 }
 0x99a   :  { %v652_v11 = vmul.f32 %v650_v8, %v645_v9 }
 0x99c   :  { %655 = vrot.lane.b32.xlu2 %v652_v11, %s2169_s18 }
 0x9a0   :  { %v590_v16 = vpop.permute.xlu1 %589 }
 0x9a1   :  { %v592_v18 = vmul.f32 %v590_v16, %v585_v17 }
 0x9a3   :  { %595 = vrot.lane.b32.xlu0 %v592_v18, %s2169_s18 }
 0x9f6   :  { %v656_v21 = vpop.permute.xlu2 %655 }
 0x9f7   :  { %v2400_v22 = vadd.f32 %v656_v21, %v653_v19 }
 0x9f9   :  { %1994 = vtanh.f32 %v2400_v22 }
 0x9ff   :  { %v1995_v23 = vpop.eup %1994 }
 0xa00   :  { %661 = vrot.lane.b32.xlu1 %v1995_v23, %s2168_s1 }
 0xa15   :  { %v596_v38 = vpop.permute.xlu0 %595 }
 0xa16   :  { %v2405_v39 = vadd.f32 %v596_v38, %v593_v31  ;;  %v2176_v31 = vmov 6   ;;  %v2437_v38 = vld [vmem:[%s2678_s0] sm:$0x3f] }
 0xa18   :  { %1996 = vtanh.f32 %v2405_v39 }
 0xa1e   :  { %v1997_v43 = vpop.eup %1996 }
 0xa1f   :  { %601 = vrot.lane.b32.xlu2 %v1997_v43, %s2168_s1 }
 0xa27   :  { %106 = vperm.xlu2 %1915, %v2199_v1  }
 0xa2f   :  { %1916 = vset.pattern.permute.xlu2 %v2176_v31 }
 0xa72   :  { %v662_v44 = vpop.permute.xlu1 %661 }
 0xa73   :  { %v664_v45 = vmul.f32 %v662_v44, %v645_v9 }
 0xa75   :  { %666 = vrot.lane.b32.xlu0 %v664_v45, %s2169_s18 }
 0xa79   :  { %v602_v46 = vpop.permute.xlu2 %601 }
 0xa7a   :  { %v604_v47 = vmul.f32 %v602_v46, %v585_v17  ;;  %v2443_v46 = vld [vmem:[#allocation2 + $0x100] ss:$0 sm:$0xff] }
 0xa7c   :  { %670 = vrot.lane.b32.xlu1 %v604_v47, %s2168_s1 }
 0xa81   :  { %v107_v49 = vpop.permute.xlu2 %106 }
 0xa82   :  { %v109_v25 = vmul.f32 %v2202_v2, %v107_v49 }
 0xa84   :  { %v110_v40 = vadd.f32 %v2204_v3, %v109_v25 }
 0xae7   :  { %v667_v42 = vpop.permute.xlu0 %666 }
 0xae8   :  { %1860 = vmatmul.msk.f32.vlgmr.msra.gmra.mxu0 %vm157_vm4, %v667_v42 }
 0xaee   :  { %v671_v30 = vpop.permute.xlu1 %670 }
 0xaef   :  { %v673_v48 = vsel %vm157_vm4, %v667_v42, %v671_v30 }
 0xaf0   :  { %1858 = vmatmul.msk.f32.vlgmr.msrb.gmra.mxu2 %vm282_vm13, %v673_v48 }
 0xb65   :  { %v753_v27 = vpop.f32.mrf.mxu0 }
 0xb66   :  { %v756_v29 = vadd.f32 %v753_v27, %v110_v40 }
 0xb68   :  { %1998 = vtanh.f32 %v756_v29  ;;  %v1861_v34 = vmul.f32 -1.442695, %v756_v29 }
 0xb6e   :  { %v1999_v33 = vpop.eup %1998 }
 0xb6f   :  { %778 = vrot.lane.b32.xlu0 %v1999_v33, %s2168_s1 }
 0xb73   :  { %v694_v1 = vpop.f32.mrf.mxu2 }
 0xb74   :  { %v695_v50 = vadd.f32 %v2249_v41, %v694_v1 }
 0xb76   :  { %2000 = vtanh.f32 %v695_v50  ;;  %v1859_v2 = vmul.f32 -1.442695, %v695_v50 }
 0xb77   :  { %2002 = vpow2.f32 %v1861_v34 }
 0xb7c   :  { %v2001_v51 = vpop.eup %2000 }
 0xb7d   :  { %718 = vrot.lane.b32.xlu1 %v2001_v51, %s2168_s1  ;;  %v2003_v52 = vpop.eup %2002 }
 0xb7e   :  { %v760_v35 = vadd.f32 1.0, %v2003_v52 }
 0xb80   :  { %2004 = vrcp.f32 %v760_v35  ;;  %v772_v54 = vand.u32 2147483648, %v760_v35  ;;  %vm766_vm10 = vweird.f32 %v760_v35  ;;  %v770_v55 = vand.u32 2147483647, %v760_v35 }
 0xb81   :  { %2006 = vpow2.f32 %v1859_v2 }
 0xb82   :  { %v773_v58 = vor.u32 1.1754944e-38, %v772_v54  ;;  %vm771_vm12 = vcmp.eq.f32.partialorder %v770_v55, 8.507059e+37 }
 0xb86   :  { %v2005_v3 = vpop.eup %2004 }
 0xb87   :  { %v2007_v36 = vpop.eup %2006  ;;  %v762_v37 = vmul.f32 %v2005_v3, %v760_v35  ;;  %vm767_vm9 = vweird.f32 %v2005_v3 }
 0xb88   :  { %v700_v24 = vadd.f32 1.0, %v2007_v36  ;;  %vm768_vm11 = vmor %vm766_vm10, %vm767_vm9 }
 0xb89   :  { %v763_v26 = vsub.f32 1.0, %v762_v37 }
 0xb8a   :  { %2008 = vrcp.f32 %v700_v24  ;;  %v712_v4 = vand.u32 2147483648, %v700_v24  ;;  %vm706_vm15 = vweird.f32 %v700_v24  ;;  %v710_v5 = vand.u32 2147483647, %v700_v24 }
 0xb8b   :  { %v764_v28 = vmul.f32 %v2005_v3, %v763_v26 }
 0xb8c   :  { %v713_v7 = vor.u32 1.1754944e-38, %v712_v4  ;;  %vm711_vm1 = vcmp.eq.f32.partialorder %v710_v5, 8.507059e+37 }
 0xb8d   :  { %v765_v53 = vadd.f32 %v2005_v3, %v764_v28 }
 0xb8f   :  { %v769_v57 = vsel %vm768_vm11, %v2005_v3, %v765_v53 }
 0xb90   :  { %v2009_v32 = vpop.eup %2008  ;;  %v774_v61 = vsel %vm771_vm12, %v773_v58, %v769_v57 }
 0xb91   :  { %v702_v56 = vmul.f32 %v2009_v32, %v700_v24  ;;  %vm707_vm14 = vweird.f32 %v2009_v32  ;;  %v782_v11 = vmul.f32 %v774_v61, %v2400_v22 }
 0xb92   :  { %vm708_vm0 = vmor %vm706_vm15, %vm707_vm14 }
 0xb93   :  { %v703_v59 = vsub.f32 1.0, %v702_v56 }
 0xb95   :  { %v704_v63 = vmul.f32 %v2009_v32, %v703_v59 }
 0xb97   :  { %v705_v0 = vadd.f32 %v2009_v32, %v704_v63 }
 0xb99   :  { %v709_v6 = vsel %vm708_vm0, %v2009_v32, %v705_v0 }
 0xb9a   :  { %v714_v9 = vsel %vm711_vm1, %v713_v7, %v709_v6 }
 0xb9b   :  { %v722_v15 = vmul.f32 %v714_v9, %v2405_v39 }
 0xbe1   :  { %v779_v60 = vpop.permute.xlu0 %778 }
 0xbe2   :  { %v781_v62 = vmul.f32 %v779_v60, %v774_v61 }
 0xbe4   :  { %784 = vrot.lane.b32.xlu2 %v781_v62, %s2169_s18 }
 0xbef   :  { %v719_v8 = vpop.permute.xlu1 %718 }
 0xbf0   :  { %v721_v10 = vmul.f32 %v719_v8, %v714_v9 }
 0xbf2   :  { %724 = vrot.lane.b32.xlu0 %v721_v10, %s2169_s18 }
 0xc3e   :  { %v785_v12 = vpop.permute.xlu2 %784 }
 0xc3f   :  { %v2423_v13 = vadd.f32 %v785_v12, %v782_v11 }
 0xc41   :  { %2010 = vtanh.f32 %v2423_v13 }
 0xc47   :  { %v2011_v14 = vpop.eup %2010 }
 0xc48   :  { %790 = vrot.lane.b32.xlu1 %v2011_v14, %s2168_s1 }
 0xc64   :  { %v725_v16 = vpop.permute.xlu0 %724 }
 0xc65   :  { %v2428_v17 = vadd.f32 %v725_v16, %v722_v15 }
 0xc67   :  { %2012 = vtanh.f32 %v2428_v17 }
 0xc6d   :  { %v2013_v18 = vpop.eup %2012 }
 0xc6e   :  { %730 = vrot.lane.b32.xlu2 %v2013_v18, %s2168_s1  ;;  %v2177_v18 = vmov 7  }
 0xc6f   :  { %1918 = vset.pattern.permute.xlu0 %v2177_v18 }
 0xc76   :  { %112 = vperm.xlu2 %1916, %v2437_v38  }
 0xc7e   :  { %1917 = vset.pattern.permute.xlu2 %v2177_v18 }
 0xcba   :  { %v791_v19 = vpop.permute.xlu1 %790 }
 0xcbb   :  { %v793_v21 = vmul.f32 %v791_v19, %v774_v61 }
 0xcbd   :  { %795 = vrot.lane.b32.xlu0 %v793_v21, %s2169_s18 }
 0xcc8   :  { %v731_v22 = vpop.permute.xlu2 %730 }
 0xcc9   :  { %v733_v23 = vmul.f32 %v731_v22, %v714_v9 }
 0xccb   :  { %799 = vrot.lane.b32.xlu1 %v733_v23, %s2168_s1 }
 0xcd0   :  { %v113_v45 = vpop.permute.xlu2 %112 }
 0xcd1   :  { %v115_v47 = vmul.f32 %v2443_v46, %v113_v45  ;;  %v2472_v45 = vld [vmem:[#allocation2 + $0x102] ss:$0 sm:$0xff] }
 0xcd3   :  { %v116_v42 = vadd.f32 %v2446_v20, %v115_v47 }
 0xd2f   :  { %v796_v39 = vpop.permute.xlu0 %795 }
 0xd30   :  { %1864 = vmatmul.msk.f32.vlgmr.msrb.gmra.mxu3 %vm157_vm4, %v796_v39 }
 0xd3d   :  { %v800_v43 = vpop.permute.xlu1 %799 }
 0xd3e   :  { %v802_v44 = vsel %vm157_vm4, %v796_v39, %v800_v43 }
 0xd3f   :  { %1862 = vmatmul.msk.f32.vlgmr.msra.gmra.mxu1 %vm282_vm13, %v802_v44 }
 0xdb3   :  { %v882_v30 = vpop.f32.mrf.mxu3 }
 0xdb4   :  { %v885_v48 = vadd.f32 %v882_v30, %v116_v42 }
 0xdb6   :  { %2014 = vtanh.f32 %v885_v48  ;;  %v1865_v29 = vmul.f32 -1.442695, %v885_v48 }
 0xdbc   :  { %v2015_v49 = vpop.eup %2014  ;;  %v823_v25 = vpop.f32.mrf.mxu1 }
 0xdbd   :  { %v824_v40 = vadd.f32 %v2249_v41, %v823_v25  ;;  %907 = vrot.lane.b32.xlu0 %v2015_v49, %s2168_s1 }
 0xdbf   :  { %2016 = vtanh.f32 %v824_v40  ;;  %v1863_v33 = vmul.f32 -1.442695, %v824_v40 }
 0xdc0   :  { %2018 = vpow2.f32 %v1865_v29 }
 0xdc1   :  { %2020 = vpow2.f32 %v1863_v33 }
 0xdc5   :  { %v2017_v27 = vpop.eup %2016 }
 0xdc6   :  { %847 = vrot.lane.b32.xlu1 %v2017_v27, %s2168_s1  ;;  %v2019_v1 = vpop.eup %2018 }
 0xdc7   :  { %v889_v50 = vadd.f32 1.0, %v2019_v1  ;;  %v2021_v51 = vpop.eup %2020 }
 0xdc8   :  { %v829_v34 = vadd.f32 1.0, %v2021_v51 }
 0xdc9   :  { %2022 = vrcp.f32 %v889_v50  ;;  %v901_v24 = vand.u32 2147483648, %v889_v50  ;;  %vm895_vm3 = vweird.f32 %v889_v50  ;;  %v899_v28 = vand.u32 2147483647, %v889_v50 }
 0xdca   :  { %2024 = vrcp.f32 %v829_v34  ;;  %v841_v59 = vand.u32 2147483648, %v829_v34  ;;  %vm835_vm8 = vweird.f32 %v829_v34  ;;  %v839_v60 = vand.u32 2147483647, %v829_v34 }
 0xdcb   :  { %v902_v53 = vor.u32 1.1754944e-38, %v901_v24  ;;  %vm900_vm6 = vcmp.eq.f32.partialorder %v899_v28, 8.507059e+37 }
 0xdcc   :  { %v842_v62 = vor.u32 1.1754944e-38, %v841_v59  ;;  %vm840_vm10 = vcmp.eq.f32.partialorder %v839_v60, 8.507059e+37 }
 0xdcf   :  { %v2023_v52 = vpop.eup %2022 }
 0xdd0   :  { %v891_v35 = vmul.f32 %v2023_v52, %v889_v50  ;;  %v2025_v41 = vpop.eup %2024  ;;  %vm896_vm2 = vweird.f32 %v2023_v52 }
 0xdd1   :  { %v831_v36 = vmul.f32 %v2025_v41, %v829_v34  ;;  %vm897_vm5 = vmor %vm895_vm3, %vm896_vm2  ;;  %vm836_vm7 = vweird.f32 %v2025_v41 }
 0xdd2   :  { %v892_v2 = vsub.f32 1.0, %v891_v35  ;;  %vm837_vm9 = vmor %vm835_vm8, %vm836_vm7 }
 0xdd3   :  { %v832_v26 = vsub.f32 1.0, %v831_v36 }
 0xdd4   :  { %v893_v3 = vmul.f32 %v2023_v52, %v892_v2 }
 0xdd5   :  { %v833_v54 = vmul.f32 %v2025_v41, %v832_v26 }
 0xdd6   :  { %v894_v37 = vadd.f32 %v2023_v52, %v893_v3 }
 0xdd7   :  { %v834_v58 = vadd.f32 %v2025_v41, %v833_v54 }
 0xdd8   :  { %v898_v32 = vsel %vm897_vm5, %v2023_v52, %v894_v37 }
 0xdd9   :  { %v903_v56 = vsel %vm900_vm6, %v902_v53, %v898_v32  ;;  %v838_v61 = vsel %vm837_vm9, %v2025_v41, %v834_v58 }
 0xdda   :  { %v843_v0 = vsel %vm840_vm10, %v842_v62, %v838_v61  ;;  %v911_v5 = vmul.f32 %v903_v56, %v2423_v13 }
 0xddb   :  { %v851_v9 = vmul.f32 %v843_v0, %v2428_v17 }
 0xe2f   :  { %v908_v55 = vpop.permute.xlu0 %907 }
 0xe30   :  { %v910_v57 = vmul.f32 %v908_v55, %v903_v56 }
 0xe32   :  { %913 = vrot.lane.b32.xlu2 %v910_v57, %s2169_s18 }
 0xe38   :  { %v848_v63 = vpop.permute.xlu1 %847 }
 0xe39   :  { %v850_v4 = vmul.f32 %v848_v63, %v843_v0 }
 0xe3b   :  { %853 = vrot.lane.b32.xlu0 %v850_v4, %s2169_s18 }
 0xe8c   :  { %v914_v6 = vpop.permute.xlu2 %913 }
 0xe8d   :  { %v2455_v7 = vadd.f32 %v914_v6, %v911_v5  ;;  %v2489_v5 = vld [vmem:[#allocation2 + $0x78] sm:$0xff]  ;;  %v2491_v6 = vld [vmem:[#allocation2 + $0x70] sm:$0xff] }
 0xe8e   :  { %1135 = vmatpush.msrb.mxu1 %v2489_v5 }
 0xe8f   :  { %2026 = vtanh.f32 %v2455_v7 }
 0xe90   :  { %1136 = vmatpush.msrb.mxu1 %v2491_v6 }
 0xe95   :  { %v2027_v8 = vpop.eup %2026 }
 0xe96   :  { %919 = vrot.lane.b32.xlu1 %v2027_v8, %s2168_s1  ;;  %v2494_v8 = vld [vmem:[#allocation2 + $0x68] sm:$0xff] }
 0xe97   :  { %1137 = vmatpush.msrb.mxu1 %v2494_v8 }
 0xead   :  { %v854_v10 = vpop.permute.xlu0 %853 }
 0xeae   :  { %v2460_v11 = vadd.f32 %v854_v10, %v851_v9  ;;  %v2497_v9 = vld [vmem:[#allocation2 + $0x60] sm:$0xff] }
 0xeaf   :  { %1138 = vmatpush.msrb.mxu1 %v2497_v9 }
 0xeb0   :  { %2028 = vtanh.f32 %v2460_v11 }
 0xeb6   :  { %v2029_v12 = vpop.eup %2028 }
 0xeb7   :  { %859 = vrot.lane.b32.xlu2 %v2029_v12, %s2168_s1 }
 0xebf   :  { %118 = vperm.xlu2 %1917, %v2437_v38  }
 0xf08   :  { %v920_v14 = vpop.permute.xlu1 %919 }
 0xf09   :  { %v922_v13 = vmul.f32 %v920_v14, %v903_v56 }
 0xf0b   :  { %924 = vrot.lane.b32.xlu0 %v922_v13, %s2169_s18 }
 0xf11   :  { %v860_v15 = vpop.permute.xlu2 %859 }
 0xf12   :  { %v862_v16 = vmul.f32 %v860_v15, %v843_v0 }
 0xf14   :  { %928 = vrot.lane.b32.xlu1 %v862_v16, %s2168_s1  ;;  %v1922_v16 = vld [vmem:[#allocation2 + $0x103] ss:$0 sm:$0xff] }
 0xf19   :  { %v119_v22 = vpop.permute.xlu2 %118 }
 0xf1a   :  { %v121_v23 = vmul.f32 %v2443_v46, %v119_v22 }
 0xf1c   :  { %v122_v31 = vadd.f32 %v2446_v20, %v121_v23 }
 0xf7d   :  { %v925_v17 = vpop.permute.xlu0 %924 }
 0xf7e   :  { %1868 = vmatmul.msk.f32.vlgmr.msra.gmra.mxu2 %vm157_vm4, %v925_v17 }
 0xf86   :  { %v929_v19 = vpop.permute.xlu1 %928 }
 0xf87   :  { %v931_v21 = vsel %vm157_vm4, %v925_v17, %v929_v19 }
 0xf88   :  { %1866 = vmatmul.msk.f32.vlgmr.msrb.gmra.mxu0 %vm282_vm13, %v931_v21 }
0x1001   :  { %v1011_v39 = vpop.f32.mrf.mxu2 }
0x1002   :  { %v1014_v43 = vadd.f32 %v1011_v39, %v122_v31 }
0x1004   :  { %2030 = vtanh.f32 %v1014_v43  ;;  %v1869_v30 = vmul.f32 -1.442695, %v1014_v43 }
0x1005   :  { %v952_v44 = vpop.f32.mrf.mxu0 }
0x1006   :  { %v953_v38 = vadd.f32 %v2472_v45, %v952_v44 }
0x1008   :  { %2032 = vtanh.f32 %v953_v38  ;;  %v1867_v46 = vmul.f32 -1.442695, %v953_v38 }
0x1009   :  { %2034 = vpow2.f32 %v1869_v30 }
0x100a   :  { %v2031_v47 = vpop.eup %2030  ;;  %2036 = vpow2.f32 %v1867_v46 }
0x100b   :  { %1036 = vrot.lane.b32.xlu1 %v2031_v47, %s2168_s1 }
0x100e   :  { %v2033_v42 = vpop.eup %2032 }
0x100f   :  { %976 = vrot.lane.b32.xlu0 %v2033_v42, %s2168_s1  ;;  %v2035_v20 = vpop.eup %2034 }
0x1010   :  { %v1018_v48 = vadd.f32 1.0, %v2035_v20  ;;  %v2037_v49 = vpop.eup %2036 }
0x1011   :  { %v958_v25 = vadd.f32 1.0, %v2037_v49 }
0x1012   :  { %2038 = vrcp.f32 %v1018_v48  ;;  %v1030_v35 = vand.u32 2147483648, %v1018_v48  ;;  %vm1024_vm12 = vweird.f32 %v1018_v48  ;;  %v1028_v2 = vand.u32 2147483647, %v1018_v48 }
0x1013   :  { %2040 = vrcp.f32 %v958_v25  ;;  %v970_v37 = vand.u32 2147483648, %v958_v25  ;;  %vm964_vm1 = vweird.f32 %v958_v25  ;;  %v968_v24 = vand.u32 2147483647, %v958_v25 }
0x1014   :  { %v1031_v36 = vor.u32 1.1754944e-38, %v1030_v35  ;;  %vm1029_vm0 = vcmp.eq.f32.partialorder %v1028_v2, 8.507059e+37 }
0x1015   :  { %v971_v54 = vor.u32 1.1754944e-38, %v970_v37  ;;  %vm969_vm3 = vcmp.eq.f32.partialorder %v968_v24, 8.507059e+37 }
0x1018   :  { %v2039_v40 = vpop.eup %2038 }
0x1019   :  { %v1020_v27 = vmul.f32 %v2039_v40, %v1018_v48  ;;  %v2041_v29 = vpop.eup %2040  ;;  %vm1025_vm11 = vweird.f32 %v2039_v40 }
0x101a   :  { %v960_v1 = vmul.f32 %v2041_v29, %v958_v25  ;;  %vm1026_vm14 = vmor %vm1024_vm12, %vm1025_vm11  ;;  %vm965_vm15 = vweird.f32 %v2041_v29 }
0x101b   :  { %v1021_v33 = vsub.f32 1.0, %v1020_v27  ;;  %vm966_vm2 = vmor %vm964_vm1, %vm965_vm15 }
0x101c   :  { %v961_v51 = vsub.f32 1.0, %v960_v1 }
0x101d   :  { %v1022_v50 = vmul.f32 %v2039_v40, %v1021_v33 }
0x101e   :  { %v962_v52 = vmul.f32 %v2041_v29, %v961_v51 }
0x101f   :  { %v1023_v34 = vadd.f32 %v2039_v40, %v1022_v50 }
0x1020   :  { %v963_v3 = vadd.f32 %v2041_v29, %v962_v52 }
0x1021   :  { %v1027_v41 = vsel %vm1026_vm14, %v2039_v40, %v1023_v34 }
0x1022   :  { %v1032_v28 = vsel %vm1029_vm0, %v1031_v36, %v1027_v41  ;;  %v967_v53 = vsel %vm966_vm2, %v2041_v29, %v963_v3 }
0x1023   :  { %v972_v56 = vsel %vm969_vm3, %v971_v54, %v967_v53  ;;  %v1040_v62 = vmul.f32 %v1032_v28, %v2455_v7 }
0x1024   :  { %v980_v58 = vmul.f32 %v972_v56, %v2460_v11 }
0x107d   :  { %v1037_v26 = vpop.permute.xlu1 %1036 }
0x107e   :  { %v1039_v32 = vmul.f32 %v1037_v26, %v1032_v28 }
0x1080   :  { %1042 = vrot.lane.b32.xlu0 %v1039_v32, %s2169_s18 }
0x1081   :  { %v977_v55 = vpop.permute.xlu0 %976 }
0x1082   :  { %v979_v57 = vmul.f32 %v977_v55, %v972_v56 }
0x1084   :  { %982 = vrot.lane.b32.xlu2 %v979_v57, %s2169_s18 }
0x10de   :  { %v983_v59 = vpop.permute.xlu2 %982 }
0x10df   :  { %v2480_v60 = vadd.f32 %v983_v59, %v980_v58 }
0x10e1   :  { %2042 = vtanh.f32 %v2480_v60 }
0x10e7   :  { %v2043_v61 = vpop.eup %2042 }
0x10e8   :  { %988 = vrot.lane.b32.xlu1 %v2043_v61, %s2168_s1 }
0x10f2   :  { %v1043_v63 = vpop.permute.xlu0 %1042 }
0x10f3   :  { %v2485_v0 = vadd.f32 %v1043_v63, %v1040_v62  ;;  %v54_v63 = vld [vmem:[#allocation2 + $0xd8] sm:$0xff] }
0x10f4   :  { %1200 = vmatpush.msrb.mxu2 %v54_v63  ;;  %1330 = vmatpush.msra.mxu1 %v54_v63 }
0x10f5   :  { %2044 = vtanh.f32 %v2485_v0 }
0x10fb   :  { %v2045_v4 = vpop.eup %2044 }
0x10fc   :  { %1048 = vrot.lane.b32.xlu2 %v2045_v4, %s2168_s1  ;;  %v51_v4 = vld [vmem:[#allocation2 + $0xc0] sm:$0xff] }
0x1156   :  { %v1049_v7 = vpop.permute.xlu2 %1048 }
0x1157   :  { %v1051_v10 = vmul.f32 %v1049_v7, %v1032_v28  ;;  %v50_v7 = vld [vmem:[#allocation2 + $0xb8] sm:$0xff] }
0x1159   :  { %1053 = vrot.lane.b32.xlu0 %v1051_v10, %s2169_s18  ;;  %v49_v10 = vld [vmem:[#allocation2 + $0xb0] sm:$0xff] }
0x115a   :  { %v989_v11 = vpop.permute.xlu1 %988 }
0x115b   :  { %v991_v12 = vmul.f32 %v989_v11, %v972_v56  ;;  %v48_v11 = vld [vmem:[#allocation2 + $0xa8] sm:$0xff] }
0x115d   :  { %1057 = vrot.lane.b32.xlu1 %v991_v12, %s2168_s1  ;;  %v47_v12 = vld [vmem:[#allocation2 + $0xa0] sm:$0xff] }
0x11cb   :  { %v1054_v14 = vpop.permute.xlu0 %1053 }
0x11cc   :  { %1872 = vmatmul.msk.f32.vlgmr.msrb.gmra.mxu1 %vm157_vm4, %v1054_v14 }
0x11cf   :  { %v1058_v13 = vpop.permute.xlu1 %1057 }
0x11d0   :  { %v1060_v15 = vsel %vm157_vm4, %v1054_v14, %v1058_v13 }
0x11d1   :  { %1870 = vmatmul.msk.f32.vlgmr.msra.gmra.mxu3 %vm282_vm13, %v1060_v15 }
0x1249   :  { %v1140_v18 = vpop.f32.mrf.mxu1 }
0x124a   :  { %v1141_v17 = vadd.f32 %v1922_v16, %v1140_v18  ;;  %v2528_v16 = vld [vmem:[#allocation2 + $0x105] ss:$0 sm:$0xff] }
0x124c   :  { %2046 = vtanh.f32 %v1141_v17  ;;  %v1873_v43 = vmul.f32 -1.442695, %v1141_v17 }
0x1252   :  { %v2047_v19 = vpop.eup %2046 }
0x1253   :  { %1164 = vrot.lane.b32.xlu0 %v2047_v19, %s2168_s1 }
0x1254   :  { %v1081_v21 = vpop.f32.mrf.mxu3 }
0x1255   :  { %v1082_v22 = vadd.f32 %v2472_v45, %v1081_v21 }
0x1257   :  { %2048 = vtanh.f32 %v1082_v22  ;;  %v1871_v31 = vmul.f32 -1.442695, %v1082_v22 }
0x1259   :  { %2050 = vpow2.f32 %v1871_v31 }
0x125a   :  { %2052 = vpow2.f32 %v1873_v43 }
0x125d   :  { %v2049_v23 = vpop.eup %2048 }
0x125e   :  { %1105 = vrot.lane.b32.xlu2 %v2049_v23, %s2168_s1 }
0x125f   :  { %v2051_v39 = vpop.eup %2050 }
0x1260   :  { %v1087_v44 = vadd.f32 1.0, %v2051_v39  ;;  %v2053_v38 = vpop.eup %2052 }
0x1261   :  { %v1146_v42 = vadd.f32 1.0, %v2053_v38 }
0x1262   :  { %2054 = vrcp.f32 %v1087_v44  ;;  %v1099_v25 = vand.u32 2147483648, %v1087_v44  ;;  %vm1093_vm6 = vweird.f32 %v1087_v44  ;;  %v1097_v40 = vand.u32 2147483647, %v1087_v44 }
0x1263   :  { %2056 = vrcp.f32 %v1146_v42  ;;  %v1158_v35 = vand.u32 2147483648, %v1146_v42  ;;  %vm1152_vm10 = vweird.f32 %v1146_v42  ;;  %v1156_v2 = vand.u32 2147483647, %v1146_v42 }
0x1264   :  { %v1100_v33 = vor.u32 1.1754944e-38, %v1099_v25  ;;  %vm1098_vm8 = vcmp.eq.f32.partialorder %v1097_v40, 8.507059e+37 }
0x1265   :  { %v1159_v3 = vor.u32 1.1754944e-38, %v1158_v35  ;;  %vm1157_vm12 = vcmp.eq.f32.partialorder %v1156_v2, 8.507059e+37 }
0x1268   :  { %v2055_v47 = vpop.eup %2054 }
0x1269   :  { %v1089_v30 = vmul.f32 %v2055_v47, %v1087_v44  ;;  %v2057_v48 = vpop.eup %2056  ;;  %vm1094_vm5 = vweird.f32 %v2055_v47 }
0x126a   :  { %v1148_v49 = vmul.f32 %v2057_v48, %v1146_v42  ;;  %vm1095_vm7 = vmor %vm1093_vm6, %vm1094_vm5  ;;  %vm1153_vm9 = vweird.f32 %v2057_v48 }
0x126b   :  { %v1090_v46 = vsub.f32 1.0, %v1089_v30  ;;  %vm1154_vm11 = vmor %vm1152_vm10, %vm1153_vm9 }
0x126c   :  { %v1149_v29 = vsub.f32 1.0, %v1148_v49 }
0x126d   :  { %v1091_v20 = vmul.f32 %v2055_v47, %v1090_v46 }
0x126e   :  { %v1150_v34 = vmul.f32 %v2057_v48, %v1149_v29  ;;  %v46_v29 = vld [vmem:[#allocation2 + $0x98] sm:$0xff] }
0x126f   :  { %v1092_v45 = vadd.f32 %v2055_v47, %v1091_v20  ;;  %1265 = vmatpush.msra.mxu0 %v46_v29  ;;  %1395 = vmatpush.msrb.mxu3 %v46_v29 }
0x1270   :  { %v1151_v52 = vadd.f32 %v2057_v48, %v1150_v34 }
0x1271   :  { %v1096_v27 = vsel %vm1095_vm7, %v2055_v47, %v1092_v45 }
0x1272   :  { %v1101_v50 = vsel %vm1098_vm8, %v1100_v33, %v1096_v27  ;;  %v1155_v41 = vsel %vm1154_vm11, %v2057_v48, %v1151_v52  ;;  %v45_v33 = vld [vmem:[#allocation2 + $0x90] sm:$0xff] }
0x1273   :  { %v1160_v37 = vsel %vm1157_vm12, %v1159_v3, %v1155_v41  ;;  %v1109_v54 = vmul.f32 %v1101_v50, %v2480_v60  ;;  %v52_v60 = vld [vmem:[#allocation2 + $0xc8] sm:$0xff]  ;;  %1266 = vmatpush.msra.mxu0 %v45_v33  ;;  %1396 = vmatpush.msrb.mxu3 %v45_v33 }
0x1274   :  { %v1168_v26 = vmul.f32 %v1160_v37, %v2485_v0  ;;  %v53_v0 = vld [vmem:[#allocation2 + $0xd0] sm:$0xff] }
0x1275   :  { %1201 = vmatpush.msrb.mxu2 %v53_v0  ;;  %1331 = vmatpush.msra.mxu1 %v53_v0 }
0x1277   :  { %1202 = vmatpush.msrb.mxu2 %v52_v60  ;;  %1332 = vmatpush.msra.mxu1 %v52_v60 }
0x1279   :  { %1203 = vmatpush.msrb.mxu2 %v51_v4  ;;  %1333 = vmatpush.msra.mxu1 %v51_v4 }
0x127b   :  { %1204 = vmatpush.msrb.mxu2 %v50_v7  ;;  %1334 = vmatpush.msra.mxu1 %v50_v7 }
0x127d   :  { %1205 = vmatpush.msrb.mxu2 %v49_v10  ;;  %1335 = vmatpush.msra.mxu1 %v49_v10 }
0x127f   :  { %1206 = vmatpush.msrb.mxu2 %v48_v11  ;;  %1336 = vmatpush.msra.mxu1 %v48_v11 }
0x1281   :  { %1207 = vmatpush.msrb.mxu2 %v47_v12  ;;  %1337 = vmatpush.msra.mxu1 %v47_v12 }
0x1283   :  { %1460 = vmatpush.msra.mxu2 %v54_v63  ;;  %1590 = vmatpush.msrb.mxu1 %v54_v63 }
0x1285   :  { %1461 = vmatpush.msra.mxu2 %v53_v0  ;;  %1591 = vmatpush.msrb.mxu1 %v53_v0 }
0x1287   :  { %1462 = vmatpush.msra.mxu2 %v52_v60  ;;  %1592 = vmatpush.msrb.mxu1 %v52_v60 }
0x1289   :  { %1463 = vmatpush.msra.mxu2 %v51_v4  ;;  %1593 = vmatpush.msrb.mxu1 %v51_v4 }
0x128b   :  { %1464 = vmatpush.msra.mxu2 %v50_v7  ;;  %1594 = vmatpush.msrb.mxu1 %v50_v7 }
0x128d   :  { %1465 = vmatpush.msra.mxu2 %v49_v10  ;;  %1595 = vmatpush.msrb.mxu1 %v49_v10 }
0x128f   :  { %1466 = vmatpush.msra.mxu2 %v48_v11  ;;  %1596 = vmatpush.msrb.mxu1 %v48_v11 }
0x1291   :  { %1467 = vmatpush.msra.mxu2 %v47_v12  ;;  %1597 = vmatpush.msrb.mxu1 %v47_v12 }
0x12b8   :  { %v1106_v1 = vpop.permute.xlu2 %1105 }
0x12b9   :  { %v1108_v51 = vmul.f32 %v1106_v1, %v1101_v50  ;;  %v44_v1 = vld [vmem:[#allocation2 + $0x88] sm:$0xff] }
0x12ba   :  { %1267 = vmatpush.msra.mxu0 %v44_v1  ;;  %1397 = vmatpush.msrb.mxu3 %v44_v1 }
0x12bb   :  { %1111 = vrot.lane.b32.xlu1 %v1108_v51, %s2169_s18 }
0x12c5   :  { %v1165_v36 = vpop.permute.xlu0 %1164 }
0x12c6   :  { %v1167_v24 = vmul.f32 %v1165_v36, %v1160_v37 }
0x12c8   :  { %1170 = vrot.lane.b32.xlu2 %v1167_v24, %s2169_s18 }
0x1322   :  { %v1171_v28 = vpop.permute.xlu2 %1170 }
0x1323   :  { %v2512_v32 = vadd.f32 %v1171_v28, %v1168_v26 }
0x1325   :  { %2058 = vtanh.f32 %v2512_v32 }
0x132b   :  { %v2059_v53 = vpop.eup %2058 }
0x132c   :  { %1176 = vrot.lane.b32.xlu1 %v2059_v53, %s2168_s1 }
0x132d   :  { %v1112_v55 = vpop.permute.xlu1 %1111 }
0x132e   :  { %v2517_v56 = vadd.f32 %v1112_v55, %v1109_v54 }
0x1330   :  { %2060 = vtanh.f32 %v2517_v56 }
0x1336   :  { %v2061_v57 = vpop.eup %2060 }
0x1337   :  { %1117 = vrot.lane.b32.xlu0 %v2061_v57, %s2168_s1 }
0x139e   :  { %v1177_v58 = vpop.permute.xlu1 %1176 }
0x139f   :  { %v1179_v59 = vmul.f32 %v1177_v58, %v1160_v37 }
0x13a1   :  { %1181 = vrot.lane.b32.xlu2 %v1179_v59, %s2169_s18 }
0x13a9   :  { %v1118_v61 = vpop.permute.xlu0 %1117 }
0x13aa   :  { %v1120_v62 = vmul.f32 %v1118_v61, %v1101_v50  ;;  %v43_v50 = vld [vmem:[#allocation2 + $0x80] sm:$0xff] }
0x13ab   :  { %1268 = vmatpush.msra.mxu0 %v43_v50  ;;  %1398 = vmatpush.msrb.mxu3 %v43_v50 }
0x13ac   :  { %1185 = vrot.lane.b32.xlu0 %v1120_v62, %s2168_s1 }
0x13ad   :  { %1269 = vmatpush.msra.mxu0 %v2489_v5  ;;  %1399 = vmatpush.msrb.mxu3 %v2489_v5 }
0x13af   :  { %1270 = vmatpush.msra.mxu0 %v2491_v6  ;;  %1400 = vmatpush.msrb.mxu3 %v2491_v6 }
0x13b1   :  { %1271 = vmatpush.msra.mxu0 %v2494_v8  ;;  %1401 = vmatpush.msrb.mxu3 %v2494_v8 }
0x13b3   :  { %1272 = vmatpush.msra.mxu0 %v2497_v9  ;;  %1402 = vmatpush.msrb.mxu3 %v2497_v9 }
0x13b5   :  { %1525 = vmatpush.msrb.mxu0 %v46_v29  ;;  %1655 = vmatpush.msra.mxu3 %v46_v29 }
0x13b7   :  { %1526 = vmatpush.msrb.mxu0 %v45_v33  ;;  %1656 = vmatpush.msra.mxu3 %v45_v33 }
0x13b9   :  { %1527 = vmatpush.msrb.mxu0 %v44_v1  ;;  %1657 = vmatpush.msra.mxu3 %v44_v1 }
0x13bb   :  { %1528 = vmatpush.msrb.mxu0 %v43_v50  ;;  %1658 = vmatpush.msra.mxu3 %v43_v50 }
0x13bd   :  { %1529 = vmatpush.msrb.mxu0 %v2489_v5  ;;  %1659 = vmatpush.msra.mxu3 %v2489_v5 }
0x13bf   :  { %1530 = vmatpush.msrb.mxu0 %v2491_v6  ;;  %1660 = vmatpush.msra.mxu3 %v2491_v6  ;;  %v2561_v6 = vld [vmem:[#allocation2 + $0x104] ss:$0 sm:$0xff] }
0x13c1   :  { %1531 = vmatpush.msrb.mxu0 %v2494_v8  ;;  %1661 = vmatpush.msra.mxu3 %v2494_v8 }
0x13c3   :  { %1532 = vmatpush.msrb.mxu0 %v2497_v9  ;;  %1662 = vmatpush.msra.mxu3 %v2497_v9 }
0x13fb   :  { %v2523_v14 = vpop.permute.xlu2 %1181 }
0x141e   :  { %v1186_v13 = vpop.permute.xlu0 %1185 }
0x141f   :  { %v1188_v15 = vsel %vm157_vm4, %v2523_v14, %v1186_v13 }
0x1420   :  { %1874 = vmatmul.msk.f32.vlgmr.msrb.gmra.mxu2 %vm282_vm13, %v1188_v15 }
0x1421   :  { %1720 = vmatpush.msrb.mxu2 %v54_v63 }
0x1423   :  { %1721 = vmatpush.msrb.mxu2 %v53_v0 }
0x1425   :  { %1722 = vmatpush.msrb.mxu2 %v52_v60 }
0x1427   :  { %1723 = vmatpush.msrb.mxu2 %v51_v4 }
0x1429   :  { %1724 = vmatpush.msrb.mxu2 %v50_v7 }
0x142b   :  { %1725 = vmatpush.msrb.mxu2 %v49_v10 }
0x142d   :  { %1726 = vmatpush.msrb.mxu2 %v48_v11 }
0x142f   :  { %1727 = vmatpush.msrb.mxu2 %v47_v12 }
0x14a3   :  { %v1209_v18 = vpop.f32.mrf.mxu2 }
0x14a4   :  { %v1210_v17 = vadd.f32 %v2528_v16, %v1209_v18 }
0x14a6   :  { %2062 = vtanh.f32 %v1210_v17  ;;  %v1875_v21 = vmul.f32 -1.442695, %v1210_v17 }
0x14a8   :  { %2064 = vpow2.f32 %v1875_v21 }
0x14ac   :  { %v2063_v19 = vpop.eup %2062 }
0x14ad   :  { %1233 = vrot.lane.b32.xlu1 %v2063_v19, %s2168_s1 }
0x14ae   :  { %v2065_v22 = vpop.eup %2064 }
0x14af   :  { %v1215_v23 = vadd.f32 1.0, %v2065_v22 }
0x14b1   :  { %2066 = vrcp.f32 %v1215_v23  ;;  %v1227_v47 = vand.u32 2147483648, %v1215_v23  ;;  %vm1221_vm15 = vweird.f32 %v1215_v23  ;;  %v1225_v42 = vand.u32 2147483647, %v1215_v23 }
0x14b3   :  { %v1228_v46 = vor.u32 1.1754944e-38, %v1227_v47  ;;  %vm1226_vm1 = vcmp.eq.f32.partialorder %v1225_v42, 8.507059e+37 }
0x14b7   :  { %v2067_v31 = vpop.eup %2066 }
0x14b8   :  { %v1217_v39 = vmul.f32 %v2067_v31, %v1215_v23  ;;  %vm1222_vm14 = vweird.f32 %v2067_v31 }
0x14b9   :  { %vm1223_vm0 = vmor %vm1221_vm15, %vm1222_vm14 }
0x14ba   :  { %v1218_v43 = vsub.f32 1.0, %v1217_v39 }
0x14bc   :  { %v1219_v44 = vmul.f32 %v2067_v31, %v1218_v43 }
0x14be   :  { %v1220_v38 = vadd.f32 %v2067_v31, %v1219_v44 }
0x14c0   :  { %v1224_v30 = vsel %vm1223_vm0, %v2067_v31, %v1220_v38 }
0x14c1   :  { %v1229_v48 = vsel %vm1226_vm1, %v1228_v46, %v1224_v30 }
0x14c2   :  { %v1237_v49 = vmul.f32 %v1229_v48, %v2517_v56 }
0x151f   :  { %v1234_v20 = vpop.permute.xlu1 %1233 }
0x1520   :  { %v1236_v45 = vmul.f32 %v1234_v20, %v1229_v48 }
0x1522   :  { %1239 = vrot.lane.b32.xlu2 %v1236_v45, %s2169_s18 }
0x157c   :  { %v1240_v25 = vpop.permute.xlu2 %1239 }
0x157d   :  { %v2534_v40 = vadd.f32 %v1240_v25, %v1237_v49 }
0x157f   :  { %2068 = vtanh.f32 %v2534_v40 }
0x1585   :  { %v2069_v27 = vpop.eup %2068 }
0x1586   :  { %1245 = vrot.lane.b32.xlu0 %v2069_v27, %s2168_s1 }
0x15f8   :  { %v1246_v51 = vpop.permute.xlu0 %1245 }
0x15f9   :  { %v2552_v34 = vmul.f32 %v1246_v51, %v1229_v48 }
0x15fb   :  { %1250 = vrot.lane.b32.xlu1 %v2552_v34, %s2168_s1 }
0x166d   :  { %v1251_v52 = vpop.permute.xlu1 %1250 }
0x166e   :  { %v1253_v5 = vsel %vm157_vm4, %v2523_v14, %v1251_v52 }
0x166f   :  { %1876 = vmatmul.msk.f32.vlgmr.msra.gmra.mxu0 %vm282_vm13, %v1253_v5 }
0x16ec   :  { %v1274_v35 = vpop.f32.mrf.mxu0 }
0x16ed   :  { %v1275_v8 = vadd.f32 %v2561_v6, %v1274_v35 }
0x16ef   :  { %2070 = vtanh.f32 %v1275_v8  ;;  %v1877_v41 = vmul.f32 -1.442695, %v1275_v8 }
0x16f1   :  { %2072 = vpow2.f32 %v1877_v41 }
0x16f5   :  { %v2071_v2 = vpop.eup %2070 }
0x16f6   :  { %1298 = vrot.lane.b32.xlu2 %v2071_v2, %s2168_s1 }
0x16f7   :  { %v2073_v9 = vpop.eup %2072 }
0x16f8   :  { %v1280_v3 = vadd.f32 1.0, %v2073_v9 }
0x16fa   :  { %2074 = vrcp.f32 %v1280_v3  ;;  %v1292_v53 = vand.u32 2147483648, %v1280_v3  ;;  %vm1286_vm3 = vweird.f32 %v1280_v3  ;;  %v1290_v54 = vand.u32 2147483647, %v1280_v3 }
0x16fc   :  { %v1293_v56 = vor.u32 1.1754944e-38, %v1292_v53  ;;  %vm1291_vm6 = vcmp.eq.f32.partialorder %v1290_v54, 8.507059e+37 }
0x1700   :  { %v2075_v36 = vpop.eup %2074 }
0x1701   :  { %v1282_v37 = vmul.f32 %v2075_v36, %v1280_v3  ;;  %vm1287_vm2 = vweird.f32 %v2075_v36 }
0x1702   :  { %vm1288_vm5 = vmor %vm1286_vm3, %vm1287_vm2 }
0x1703   :  { %v1283_v24 = vsub.f32 1.0, %v1282_v37 }
0x1705   :  { %v1284_v26 = vmul.f32 %v2075_v36, %v1283_v24 }
0x1707   :  { %v1285_v28 = vadd.f32 %v2075_v36, %v1284_v26 }
0x1709   :  { %v1289_v55 = vsel %vm1288_vm5, %v2075_v36, %v1285_v28 }
0x170a   :  { %v1294_v58 = vsel %vm1291_vm6, %v1293_v56, %v1289_v55 }
0x170b   :  { %v1302_v61 = vmul.f32 %v1294_v58, %v2512_v32 }
0x1750   :  { %v1299_v57 = vpop.permute.xlu2 %1298 }
0x1751   :  { %v1301_v59 = vmul.f32 %v1299_v57, %v1294_v58 }
0x1753   :  { %1304 = vrot.lane.b32.xlu0 %v1301_v59, %s2169_s18 }
0x17c5   :  { %v1305_v62 = vpop.permute.xlu0 %1304 }
0x17c6   :  { %v2567_v63 = vadd.f32 %v1305_v62, %v1302_v61 }
0x17c8   :  { %2076 = vtanh.f32 %v2567_v63 }
0x17ce   :  { %v2077_v0 = vpop.eup %2076 }
0x17cf   :  { %1310 = vrot.lane.b32.xlu1 %v2077_v0, %s2168_s1 }
0x1841   :  { %v1311_v60 = vpop.permute.xlu1 %1310 }
0x1842   :  { %v1313_v4 = vmul.f32 %v1311_v60, %v1294_v58 }
0x1844   :  { %1315 = vrot.lane.b32.xlu2 %v1313_v4, %s2169_s18 }
0x189e   :  { %v1316_v7 = vpop.permute.xlu2 %1315 }
0x189f   :  { %v1318_v10 = vsel %vm157_vm4, %v1316_v7, %v1251_v52 }
0x18a0   :  { %1878 = vmatmul.msk.f32.vlgmr.msra.gmra.mxu1 %vm282_vm13, %v1318_v10 }
0x191d   :  { %v1339_v11 = vpop.f32.mrf.mxu1 }
0x191e   :  { %v1340_v32 = vadd.f32 %v2528_v16, %v1339_v11 }
0x1920   :  { %2078 = vtanh.f32 %v1340_v32  ;;  %v1879_v14 = vmul.f32 -1.442695, %v1340_v32 }
0x1922   :  { %2080 = vpow2.f32 %v1879_v14 }
0x1926   :  { %v2079_v12 = vpop.eup %2078 }
0x1927   :  { %1363 = vrot.lane.b32.xlu0 %v2079_v12, %s2168_s1 }
0x1928   :  { %v2081_v13 = vpop.eup %2080 }
0x1929   :  { %v1345_v15 = vadd.f32 1.0, %v2081_v13 }
0x192b   :  { %2082 = vrcp.f32 %v1345_v15  ;;  %v1357_v23 = vand.u32 2147483648, %v1345_v15  ;;  %vm1351_vm8 = vweird.f32 %v1345_v15  ;;  %v1355_v31 = vand.u32 2147483647, %v1345_v15 }
0x192d   :  { %v1358_v43 = vor.u32 1.1754944e-38, %v1357_v23  ;;  %vm1356_vm10 = vcmp.eq.f32.partialorder %v1355_v31, 8.507059e+37 }
0x1931   :  { %v2083_v18 = vpop.eup %2082 }
0x1932   :  { %v1347_v17 = vmul.f32 %v2083_v18, %v1345_v15  ;;  %vm1352_vm7 = vweird.f32 %v2083_v18 }
0x1933   :  { %vm1353_vm9 = vmor %vm1351_vm8, %vm1352_vm7 }
0x1934   :  { %v1348_v19 = vsub.f32 1.0, %v1347_v17 }
0x1936   :  { %v1349_v21 = vmul.f32 %v2083_v18, %v1348_v19 }
0x1938   :  { %v1350_v22 = vadd.f32 %v2083_v18, %v1349_v21 }
0x193a   :  { %v1354_v39 = vsel %vm1353_vm9, %v2083_v18, %v1350_v22 }
0x193b   :  { %v1359_v38 = vsel %vm1356_vm10, %v1358_v43, %v1354_v39 }
0x193c   :  { %v1367_v42 = vmul.f32 %v1359_v38, %v2534_v40 }
0x1999   :  { %v1364_v44 = vpop.permute.xlu0 %1363 }
0x199a   :  { %v1366_v47 = vmul.f32 %v1364_v44, %v1359_v38 }
0x199c   :  { %1369 = vrot.lane.b32.xlu1 %v1366_v47, %s2169_s18 }
0x1a0e   :  { %v1370_v30 = vpop.permute.xlu1 %1369 }
0x1a0f   :  { %v2578_v46 = vadd.f32 %v1370_v30, %v1367_v42 }
0x1a11   :  { %2084 = vtanh.f32 %v2578_v46 }
0x1a17   :  { %v2085_v20 = vpop.eup %2084 }
0x1a18   :  { %1375 = vrot.lane.b32.xlu2 %v2085_v20, %s2168_s1 }
0x1a72   :  { %v1376_v48 = vpop.permute.xlu2 %1375 }
0x1a73   :  { %v2582_v45 = vmul.f32 %v1376_v48, %v1359_v38 }
0x1a75   :  { %1380 = vrot.lane.b32.xlu0 %v2582_v45, %s2168_s1 }
0x1ae7   :  { %v1381_v49 = vpop.permute.xlu0 %1380 }
0x1ae8   :  { %v1383_v25 = vsel %vm157_vm4, %v1316_v7, %v1381_v49 }
0x1ae9   :  { %1880 = vmatmul.msk.f32.vlgmr.msrb.gmra.mxu3 %vm282_vm13, %v1383_v25 }
0x1b6c   :  { %v1404_v40 = vpop.f32.mrf.mxu3 }
0x1b6d   :  { %v1405_v27 = vadd.f32 %v2561_v6, %v1404_v40 }
0x1b6f   :  { %2086 = vtanh.f32 %v1405_v27  ;;  %v1881_v33 = vmul.f32 -1.442695, %v1405_v27 }
0x1b71   :  { %2088 = vpow2.f32 %v1881_v33 }
0x1b75   :  { %v2087_v29 = vpop.eup %2086 }
0x1b76   :  { %1428 = vrot.lane.b32.xlu1 %v2087_v29, %s2168_s1 }
0x1b77   :  { %v2089_v1 = vpop.eup %2088 }
0x1b78   :  { %v1410_v50 = vadd.f32 1.0, %v2089_v1 }
0x1b7a   :  { %2090 = vrcp.f32 %v1410_v50  ;;  %v1422_v2 = vand.u32 2147483648, %v1410_v50  ;;  %vm1416_vm12 = vweird.f32 %v1410_v50  ;;  %v1420_v41 = vand.u32 2147483647, %v1410_v50 }
0x1b7c   :  { %v1423_v3 = vor.u32 1.1754944e-38, %v1422_v2  ;;  %vm1421_vm15 = vcmp.eq.f32.partialorder %v1420_v41, 8.507059e+37 }
0x1b80   :  { %v2091_v51 = vpop.eup %2090 }
0x1b81   :  { %v1412_v52 = vmul.f32 %v2091_v51, %v1410_v50  ;;  %vm1417_vm11 = vweird.f32 %v2091_v51 }
0x1b82   :  { %vm1418_vm14 = vmor %vm1416_vm12, %vm1417_vm11 }
0x1b83   :  { %v1413_v5 = vsub.f32 1.0, %v1412_v52 }
0x1b85   :  { %v1414_v35 = vmul.f32 %v2091_v51, %v1413_v5 }
0x1b87   :  { %v1415_v8 = vadd.f32 %v2091_v51, %v1414_v35 }
0x1b89   :  { %v1419_v9 = vsel %vm1418_vm14, %v2091_v51, %v1415_v8 }
0x1b8a   :  { %v1424_v37 = vsel %vm1421_vm15, %v1423_v3, %v1419_v9 }
0x1b8b   :  { %v1432_v26 = vmul.f32 %v1424_v37, %v2567_v63 }
0x1be8   :  { %v1429_v36 = vpop.permute.xlu1 %1428 }
0x1be9   :  { %v1431_v24 = vmul.f32 %v1429_v36, %v1424_v37 }
0x1beb   :  { %1434 = vrot.lane.b32.xlu2 %v1431_v24, %s2169_s18 }
0x1c45   :  { %v1435_v28 = vpop.permute.xlu2 %1434 }
0x1c46   :  { %v2592_v53 = vadd.f32 %v1435_v28, %v1432_v26 }
0x1c48   :  { %2092 = vtanh.f32 %v2592_v53 }
0x1c4e   :  { %v2093_v54 = vpop.eup %2092 }
0x1c4f   :  { %1440 = vrot.lane.b32.xlu0 %v2093_v54, %s2168_s1 }
0x1cc1   :  { %v1441_v55 = vpop.permute.xlu0 %1440 }
0x1cc2   :  { %v1443_v56 = vmul.f32 %v1441_v55, %v1424_v37 }
0x1cc4   :  { %1445 = vrot.lane.b32.xlu1 %v1443_v56, %s2169_s18 }
0x1d36   :  { %v1446_v57 = vpop.permute.xlu1 %1445 }
0x1d37   :  { %v1448_v58 = vsel %vm157_vm4, %v1446_v57, %v1381_v49 }
0x1d38   :  { %1882 = vmatmul.msk.f32.vlgmr.msra.gmra.mxu2 %vm282_vm13, %v1448_v58 }
0x1dbb   :  { %v1469_v59 = vpop.f32.mrf.mxu2 }
0x1dbc   :  { %v1470_v61 = vadd.f32 %v2528_v16, %v1469_v59 }
0x1dbe   :  { %2094 = vtanh.f32 %v1470_v61  ;;  %v1883_v63 = vmul.f32 -1.442695, %v1470_v61 }
0x1dc0   :  { %2096 = vpow2.f32 %v1883_v63 }
0x1dc4   :  { %v2095_v62 = vpop.eup %2094 }
0x1dc5   :  { %1493 = vrot.lane.b32.xlu2 %v2095_v62, %s2168_s1 }
0x1dc6   :  { %v2097_v0 = vpop.eup %2096 }
0x1dc7   :  { %v1475_v60 = vadd.f32 1.0, %v2097_v0 }
0x1dc9   :  { %2098 = vrcp.f32 %v1475_v60  ;;  %v1487_v12 = vand.u32 2147483648, %v1475_v60  ;;  %vm1481_vm1 = vweird.f32 %v1475_v60  ;;  %v1485_v14 = vand.u32 2147483647, %v1475_v60 }
0x1dcb   :  { %v1488_v15 = vor.u32 1.1754944e-38, %v1487_v12  ;;  %vm1486_vm3 = vcmp.eq.f32.partialorder %v1485_v14, 8.507059e+37 }
0x1dcf   :  { %v2099_v4 = vpop.eup %2098 }
0x1dd0   :  { %v1477_v7 = vmul.f32 %v2099_v4, %v1475_v60  ;;  %vm1482_vm0 = vweird.f32 %v2099_v4 }
0x1dd1   :  { %vm1483_vm2 = vmor %vm1481_vm1, %vm1482_vm0 }
0x1dd2   :  { %v1478_v10 = vsub.f32 1.0, %v1477_v7 }
0x1dd4   :  { %v1479_v11 = vmul.f32 %v2099_v4, %v1478_v10 }
0x1dd6   :  { %v1480_v32 = vadd.f32 %v2099_v4, %v1479_v11 }
0x1dd8   :  { %v1484_v13 = vsel %vm1483_vm2, %v2099_v4, %v1480_v32  ;;  %vm1775_vm2 = vcmask 1045504  }
0x1dd9   :  { %v1489_v17 = vsel %vm1486_vm3, %v1488_v15, %v1484_v13 }
0x1dda   :  { %v1497_v21 = vmul.f32 %v1489_v17, %v2578_v46 }
0x1e1f   :  { %v1494_v18 = vpop.permute.xlu2 %1493 }
0x1e20   :  { %v1496_v19 = vmul.f32 %v1494_v18, %v1489_v17 }
0x1e22   :  { %1499 = vrot.lane.b32.xlu0 %v1496_v19, %s2169_s18 }
0x1e94   :  { %v1500_v22 = vpop.permute.xlu0 %1499 }
0x1e95   :  { %v2603_v23 = vadd.f32 %v1500_v22, %v1497_v21 }
0x1e97   :  { %2100 = vtanh.f32 %v2603_v23 }
0x1e9d   :  { %v2101_v31 = vpop.eup %2100 }
0x1e9e   :  { %1505 = vrot.lane.b32.xlu1 %v2101_v31, %s2168_s1 }
0x1f10   :  { %v1506_v39 = vpop.permute.xlu1 %1505 }
0x1f11   :  { %v2607_v43 = vmul.f32 %v1506_v39, %v1489_v17 }
0x1f13   :  { %1510 = vrot.lane.b32.xlu2 %v2607_v43, %s2168_s1 }
0x1f6d   :  { %v1511_v44 = vpop.permute.xlu2 %1510 }
0x1f6e   :  { %v1513_v38 = vsel %vm157_vm4, %v1446_v57, %v1511_v44 }
0x1f6f   :  { %1884 = vmatmul.msk.f32.vlgmr.msrb.gmra.mxu0 %vm282_vm13, %v1513_v38 }
0x1fec   :  { %v1534_v47 = vpop.f32.mrf.mxu0 }
0x1fed   :  { %v1535_v42 = vadd.f32 %v2561_v6, %v1534_v47 }
0x1fef   :  { %2102 = vtanh.f32 %v1535_v42  ;;  %v1885_v46 = vmul.f32 -1.442695, %v1535_v42 }
0x1ff1   :  { %2104 = vpow2.f32 %v1885_v46 }
0x1ff5   :  { %v2103_v30 = vpop.eup %2102 }
0x1ff6   :  { %1558 = vrot.lane.b32.xlu0 %v2103_v30, %s2168_s1 }
0x1ff7   :  { %v2105_v20 = vpop.eup %2104 }
0x1ff8   :  { %v1540_v48 = vadd.f32 1.0, %v2105_v20 }
0x1ffa   :  { %2106 = vrcp.f32 %v1540_v48  ;;  %v1552_v33 = vand.u32 2147483648, %v1540_v48  ;;  %vm1546_vm6 = vweird.f32 %v1540_v48  ;;  %v1550_v1 = vand.u32 2147483647, %v1540_v48 }
0x1ffc   :  { %v1553_v51 = vor.u32 1.1754944e-38, %v1552_v33  ;;  %vm1551_vm8 = vcmp.eq.f32.partialorder %v1550_v1, 8.507059e+37 }
0x2000   :  { %v2107_v49 = vpop.eup %2106 }
0x2001   :  { %v1542_v25 = vmul.f32 %v2107_v49, %v1540_v48  ;;  %vm1547_vm5 = vweird.f32 %v2107_v49 }
0x2002   :  { %vm1548_vm7 = vmor %vm1546_vm6, %vm1547_vm5 }
0x2003   :  { %v1543_v40 = vsub.f32 1.0, %v1542_v25 }
0x2005   :  { %v1544_v27 = vmul.f32 %v2107_v49, %v1543_v40 }
0x2007   :  { %v1545_v29 = vadd.f32 %v2107_v49, %v1544_v27 }
0x2009   :  { %v1549_v50 = vsel %vm1548_vm7, %v2107_v49, %v1545_v29  ;;  %vm1777_vm7 = vcmask 1043456  }
0x200a   :  { %v1554_v5 = vsel %vm1551_vm8, %v1553_v51, %v1549_v50  ;;  %vm1779_vm8 = vcmask 1041408  }
0x200b   :  { %v1562_v8 = vmul.f32 %v1554_v5, %v2592_v53 }
0x2068   :  { %v1559_v52 = vpop.permute.xlu0 %1558 }
0x2069   :  { %v1561_v35 = vmul.f32 %v1559_v52, %v1554_v5 }
0x206b   :  { %1564 = vrot.lane.b32.xlu1 %v1561_v35, %s2169_s18 }
0x20dd   :  { %v1565_v2 = vpop.permute.xlu1 %1564 }
0x20de   :  { %v2617_v41 = vadd.f32 %v1565_v2, %v1562_v8 }
0x20e0   :  { %2108 = vtanh.f32 %v2617_v41 }
0x20e6   :  { %v2109_v9 = vpop.eup %2108 }
0x20e7   :  { %1570 = vrot.lane.b32.xlu2 %v2109_v9, %s2168_s1  ;;  %v1769_v9 = vrot.slane %v2582_v45, 2 }
0x2141   :  { %v1571_v3 = vpop.permute.xlu2 %1570 }
0x2142   :  { %v1573_v36 = vmul.f32 %v1571_v3, %v1554_v5  ;;  %v1776_v3 = vsel %vm1775_vm2, %v2552_v34, %v1769_v9 }
0x2144   :  { %1575 = vrot.lane.b32.xlu0 %v1573_v36, %s2169_s18 }
0x21b6   :  { %v1576_v37 = vpop.permute.xlu0 %1575 }
0x21b7   :  { %v1578_v24 = vsel %vm157_vm4, %v1576_v37, %v1511_v44 }
0x21b8   :  { %1886 = vmatmul.msk.f32.vlgmr.msrb.gmra.mxu1 %vm282_vm13, %v1578_v24 }
0x2235   :  { %v1599_v26 = vpop.f32.mrf.mxu1 }
0x2236   :  { %v1600_v28 = vadd.f32 %v2528_v16, %v1599_v26  ;;  %v58_v26 = vld [vmem:[#allocation2 + $0xf8] sm:$0xff] }
0x2237   :  { %1813 = vmatpush.msra.mxu0 %v58_v26 }
0x2238   :  { %2110 = vtanh.f32 %v1600_v28  ;;  %v1887_v54 = vmul.f32 -1.442695, %v1600_v28  ;;  %v57_v28 = vld [vmem:[#allocation2 + $0xf0] sm:$0xff] }
0x2239   :  { %1814 = vmatpush.msra.mxu0 %v57_v28 }
0x223a   :  { %2112 = vpow2.f32 %v1887_v54 }
0x223e   :  { %v2111_v53 = vpop.eup %2110 }
0x223f   :  { %1623 = vrot.lane.b32.xlu1 %v2111_v53, %s2168_s1  ;;  %v56_v53 = vld [vmem:[#allocation2 + $0xe8] sm:$0xff] }
0x2240   :  { %v2113_v55 = vpop.eup %2112  ;;  %1815 = vmatpush.msra.mxu0 %v56_v53 }
0x2241   :  { %v1605_v56 = vadd.f32 1.0, %v2113_v55 }
0x2243   :  { %2114 = vrcp.f32 %v1605_v56  ;;  %v1617_v63 = vand.u32 2147483648, %v1605_v56  ;;  %vm1611_vm10 = vweird.f32 %v1605_v56  ;;  %v1615_v0 = vand.u32 2147483647, %v1605_v56 }
0x2245   :  { %v1618_v4 = vor.u32 1.1754944e-38, %v1617_v63  ;;  %vm1616_vm12 = vcmp.eq.f32.partialorder %v1615_v0, 8.507059e+37 }
0x2249   :  { %v2115_v57 = vpop.eup %2114 }
0x224a   :  { %v1607_v58 = vmul.f32 %v2115_v57, %v1605_v56  ;;  %vm1612_vm9 = vweird.f32 %v2115_v57 }
0x224b   :  { %vm1613_vm11 = vmor %vm1611_vm10, %vm1612_vm9  ;;  %vm1830_vm9 = vcmask 7168   ;;  %vm1834_vm10 = vcmask 5120  }
0x224c   :  { %v1608_v59 = vsub.f32 1.0, %v1607_v58 }
0x224e   :  { %v1609_v61 = vmul.f32 %v2115_v57, %v1608_v59 }
0x2250   :  { %v1610_v62 = vadd.f32 %v2115_v57, %v1609_v61 }
0x2252   :  { %v1614_v60 = vsel %vm1613_vm11, %v2115_v57, %v1610_v62 }
0x2253   :  { %v1619_v10 = vsel %vm1616_vm12, %v1618_v4, %v1614_v60  ;;  %v1771_v60 = vrot.slane %v2607_v43, 4 }
0x2254   :  { %v1627_v32 = vmul.f32 %v1619_v10, %v2603_v23 }
0x22b1   :  { %v1624_v7 = vpop.permute.xlu1 %1623 }
0x22b2   :  { %v1626_v11 = vmul.f32 %v1624_v7, %v1619_v10  ;;  %v1778_v7 = vsel %vm1777_vm7, %v1769_v9, %v1771_v60 }
0x22b4   :  { %1629 = vrot.lane.b32.xlu2 %v1626_v11, %s2169_s18 }
0x230e   :  { %v1630_v12 = vpop.permute.xlu2 %1629 }
0x230f   :  { %v2628_v14 = vadd.f32 %v1630_v12, %v1627_v32 }
0x2311   :  { %2116 = vtanh.f32 %v2628_v14 }
0x2317   :  { %v2117_v13 = vpop.eup %2116 }
0x2318   :  { %1635 = vrot.lane.b32.xlu0 %v2117_v13, %s2168_s1 }
0x238a   :  { %v1636_v15 = vpop.permute.xlu0 %1635 }
0x238b   :  { %v2632_v18 = vmul.f32 %v1636_v15, %v1619_v10  ;;  %v1925_v15 = vld [vmem:[#allocation2 + $0x106] ss:$0 sm:$0xff] }
0x238d   :  { %1640 = vrot.lane.b32.xlu1 %v2632_v18, %s2168_s1  ;;  %v1773_v43 = vrot.slane %v2632_v18, 6 }
0x23ff   :  { %v1641_v17 = vpop.permute.xlu1 %1640 }
0x2400   :  { %v1643_v19 = vsel %vm157_vm4, %v1576_v37, %v1641_v17 }
0x2401   :  { %1888 = vmatmul.msk.f32.vlgmr.msra.gmra.mxu3 %vm282_vm13, %v1643_v19  ;;  %v1780_v19 = vsel %vm1779_vm8, %v1771_v60, %v1773_v43 }
0x2484   :  { %v1664_v21 = vpop.f32.mrf.mxu3 }
0x2485   :  { %v1665_v22 = vadd.f32 %v2561_v6, %v1664_v21 }
0x2487   :  { %2118 = vtanh.f32 %v1665_v22  ;;  %v1889_v31 = vmul.f32 -1.442695, %v1665_v22 }
0x2489   :  { %2120 = vpow2.f32 %v1889_v31 }
0x248d   :  { %v2119_v23 = vpop.eup %2118 }
0x248e   :  { %1688 = vrot.lane.b32.xlu2 %v2119_v23, %s2168_s1 }
0x248f   :  { %v2121_v39 = vpop.eup %2120 }
0x2490   :  { %v1670_v44 = vadd.f32 1.0, %v2121_v39 }
0x2492   :  { %2122 = vrcp.f32 %v1670_v44  ;;  %v1682_v20 = vand.u32 2147483648, %v1670_v44  ;;  %vm1676_vm15 = vweird.f32 %v1670_v44  ;;  %v1680_v48 = vand.u32 2147483647, %v1670_v44 }
0x2494   :  { %v1683_v49 = vor.u32 1.1754944e-38, %v1682_v20  ;;  %vm1681_vm1 = vcmp.eq.f32.partialorder %v1680_v48, 8.507059e+37 }
0x2498   :  { %v2123_v38 = vpop.eup %2122 }
0x2499   :  { %v1672_v47 = vmul.f32 %v2123_v38, %v1670_v44  ;;  %vm1677_vm14 = vweird.f32 %v2123_v38 }
0x249a   :  { %vm1678_vm0 = vmor %vm1676_vm15, %vm1677_vm14 }
0x249b   :  { %v1673_v42 = vsub.f32 1.0, %v1672_v47 }
0x249d   :  { %v1674_v30 = vmul.f32 %v2123_v38, %v1673_v42 }
0x249f   :  { %v1675_v46 = vadd.f32 %v2123_v38, %v1674_v30 }
0x24a1   :  { %v1679_v6 = vsel %vm1678_vm0, %v2123_v38, %v1675_v46 }
0x24a2   :  { %v1684_v40 = vsel %vm1681_vm1, %v1683_v49, %v1679_v6 }
0x24a3   :  { %v1692_v29 = vmul.f32 %v1684_v40, %v2617_v41 }
0x24e8   :  { %v1689_v25 = vpop.permute.xlu2 %1688 }
0x24e9   :  { %v1691_v27 = vmul.f32 %v1689_v25, %v1684_v40 }
0x24eb   :  { %1694 = vrot.lane.b32.xlu0 %v1691_v27, %s2169_s18 }
0x255d   :  { %v1695_v33 = vpop.permute.xlu0 %1694 }
0x255e   :  { %v1697_v1 = vadd.f32 %v1695_v33, %v1692_v29 }
0x2560   :  { %2124 = vtanh.f32 %v1697_v1 }
0x2566   :  { %v2125_v50 = vpop.eup %2124 }
0x2567   :  { %1700 = vrot.lane.b32.xlu1 %v2125_v50, %s2168_s1 }
0x25d9   :  { %v1701_v51 = vpop.permute.xlu1 %1700 }
0x25da   :  { %v1703_v52 = vmul.f32 %v1701_v51, %v1684_v40 }
0x25dc   :  { %1705 = vrot.lane.b32.xlu2 %v1703_v52, %s2169_s18 }
0x2636   :  { %v1706_v5 = vpop.permute.xlu2 %1705 }
0x2637   :  { %v1708_v35 = vsel %vm157_vm4, %v1706_v5, %v1641_v17 }
0x2638   :  { %1890 = vmatmul.msk.f32.vlgmr.msrb.gmra.mxu2 %vm282_vm13, %v1708_v35 }
0x26bb   :  { %v1729_v8 = vpop.f32.mrf.mxu2 }
0x26bc   :  { %v1730_v2 = vadd.f32 %v2528_v16, %v1729_v8  ;;  %v55_v16 = vld [vmem:[#allocation2 + $0xe0] sm:$0xff] }
0x26bd   :  { %1816 = vmatpush.msra.mxu0 %v55_v16 }
0x26be   :  { %2126 = vtanh.f32 %v1730_v2  ;;  %v1891_v36 = vmul.f32 -1.442695, %v1730_v2 }
0x26c0   :  { %2128 = vpow2.f32 %v1891_v36 }
0x26c4   :  { %v2127_v41 = vpop.eup %2126 }
0x26c5   :  { %1753 = vrot.lane.b32.xlu0 %v2127_v41, %s2168_s1 }
0x26c6   :  { %v2129_v37 = vpop.eup %2128 }
0x26c7   :  { %v1735_v24 = vadd.f32 1.0, %v2129_v37 }
0x26c9   :  { %2130 = vrcp.f32 %v1735_v24  ;;  %v1747_v57 = vand.u32 2147483648, %v1735_v24  ;;  %vm1741_vm3 = vweird.f32 %v1735_v24  ;;  %v1745_v58 = vand.u32 2147483647, %v1735_v24 }
0x26cb   :  { %v1748_v61 = vor.u32 1.1754944e-38, %v1747_v57  ;;  %vm1746_vm6 = vcmp.eq.f32.partialorder %v1745_v58, 8.507059e+37 }
0x26cd   :  { %1785 = vrot.lane.b32.xlu0 %v1776_v3, %s2169_s18 }
0x26cf   :  { %v2131_v54 = vpop.eup %2130 }
0x26d0   :  { %v1737_v45 = vmul.f32 %v2131_v54, %v1735_v24  ;;  %vm1742_vm13 = vweird.f32 %v2131_v54 }
0x26d1   :  { %vm1743_vm5 = vmor %vm1741_vm3, %vm1742_vm13 }
0x26d2   :  { %v1738_v55 = vsub.f32 1.0, %v1737_v45 }
0x26d4   :  { %v1739_v56 = vmul.f32 %v2131_v54, %v1738_v55 }
0x26d6   :  { %v1740_v34 = vadd.f32 %v2131_v54, %v1739_v56 }
0x26d8   :  { %v1744_v59 = vsel %vm1743_vm5, %v2131_v54, %v1740_v34 }
0x26d9   :  { %v1749_v63 = vsel %vm1746_vm6, %v1748_v61, %v1744_v59 }
0x26da   :  { %v1757_v10 = vmul.f32 %v1749_v63, %v2628_v14 }
0x2737   :  { %v1754_v62 = vpop.permute.xlu0 %1753 }
0x2738   :  { %v1756_v0 = vmul.f32 %v1754_v62, %v1749_v63 }
0x273a   :  { %1759 = vrot.lane.b32.xlu1 %v1756_v0, %s2169_s18 }
0x273f   :  { %v1786_v4 = vpop.permute.xlu0 %1785 }
0x2740   :  { %1892 = vmatmul.msk.f32.vlgmr.msra.gmra.mxu0 %vm157_vm4, %v1786_v4 }
0x2742   :  { %1787 = vrot.lane.b32.xlu1 %v1778_v7, %s2169_s18 }
0x27ac   :  { %v1760_v11 = vpop.permute.xlu1 %1759 }
0x27ad   :  { %v1762_v32 = vadd.f32 %v1760_v11, %v1757_v10 }
0x27af   :  { %2132 = vtanh.f32 %v1762_v32 }
0x27b4   :  { %v1788_v12 = vpop.permute.xlu1 %1787 }
0x27b5   :  { %v2133_v13 = vpop.eup %2132  ;;  %1893 = vmatmul.msk.f32.gmra.mxu0 %vm157_vm4, %v1788_v12 }
0x27b6   :  { %1765 = vrot.lane.b32.xlu2 %v2133_v13, %s2168_s1 }
0x27bd   :  { %v1818_v17 = vpop.f32.mrf.mxu0 }
0x27be   :  { %v1819_v21 = vadd.f32 %v1925_v15, %v1818_v17  ;;  %1789 = vrot.lane.b32.xlu2 %v1780_v19, %s2169_s18 }
0x27c0   :  { %1831 = vst.msk [vmem:[%s2680_s2] sm:$0xff] %vm1830_vm9, %v1819_v21 }
0x2810   :  { %v1766_v14 = vpop.permute.xlu2 %1765 }
0x2811   :  { %v1768_v22 = vmul.f32 %v1766_v14, %v1749_v63 }
0x2813   :  { %1791 = vrot.lane.b32.xlu0 %v1768_v22, %s2169_s18 }
0x2818   :  { %v1790_v23 = vpop.permute.xlu2 %1789 }
0x2819   :  { %1894 = vmatmul.msk.f32.gmra.mxu0 %vm157_vm4, %v1790_v23 }
0x2832   :  { %v1821_v18 = vpop.f32.mrf.mxu0 }
0x2833   :  { %v1822_v31 = vadd.f32 %v1925_v15, %v1821_v18 }
0x2835   :  { %1832 = vst.msk [vmem:[%s2680_s2 + $0x8] sm:$0xff] %vm1830_vm9, %v1822_v31 }
0x2885   :  { %v1792_v39 = vpop.permute.xlu0 %1791 }
0x2886   :  { %1895 = vmatmul.msk.f32.gmra.mxu0 %vm157_vm4, %v1792_v39 }
0x2896   :  { %v1824_v44 = vpop.f32.mrf.mxu0 }
0x2897   :  { %v1825_v38 = vadd.f32 %v1925_v15, %v1824_v44 }
0x2899   :  { %1833 = vst.msk [vmem:[%s2680_s2 + $0x10] sm:$0xff] %vm1830_vm9, %v1825_v38 }
0x2903   :  { %v1827_v47 = vpop.f32.mrf.mxu0 }
0x2904   :  { %v1828_v42 = vadd.f32 %v1925_v15, %v1827_v47 }
0x2906   :  { %1835 = vst.msk [vmem:[%s2680_s2 + $0x18] sm:$0x3f] %vm1834_vm10, %v1828_v42 }
0x2907   :  { %1840 = vsyncpa [#allocation3], 1 }

</bundles_post_ra>
